<compile_context>
chip_gen: v5e
topology: v5e:2x2
jax: 0.10.0
libtpu: 0.0.40
codegen_flags: <defaults>
</compile_context>

<pallas_src>
import math
from functools import partial

import numpy as np
import jax
import jax.numpy as jnp
from jax import lax
from jax.experimental import pallas as pl
from jax.experimental.pallas import tpu as pltpu


# ------------------------- config (mirrors ModelArgs.__post_init__) -------------------------
def find_multiple(n: int, k: int) -> int:
    if n % k == 0:
        return n
    return n + k - n % k


DIM = 64
N_HEADS = 4
N_KV_HEADS = 2                      # GQA: n_rep = 2
HEAD_DIM = DIM // N_HEADS           # 16
N_LAYERS = 2
VOCAB = 64
MAX_SEQ_LEN = 16
MULTIPLE_OF = 32
HIDDEN_DIM = find_multiple(int(2 * (4 * DIM) / 3), MULTIPLE_OF)   # 192
NORM_EPS = 1e-5
ROPE_BASE = 10000.0
N_REP = N_HEADS // N_KV_HEADS
ZERO_IDX = -1

BATCH = 2
SEQLEN = 8

Q_DIM = N_HEADS * HEAD_DIM          # 64
KV_DIM = N_KV_HEADS * HEAD_DIM      # 32
QKV_DIM = Q_DIM + 2 * KV_DIM        # 128


# ------------------------- in-kernel helpers (traced inside Pallas) -------------------------
def _rmsnorm(x, w, eps):
    var = jnp.mean(x * x, axis=-1, keepdims=True)
    return (x * lax.rsqrt(var + eps)) * w


# ------------------------------------ fused forward kernel ------------------------------------
def fwd_kernel(tok_ref, emb_ref, cos_ref, sine_ref, sino_ref,
               attn_norm_ref, wqkv_ref, wo_ref,
               ffn_norm_ref, w13_ref, w2_ref,
               final_norm_ref, outw_ref,
               logits_ref, h_ref,
               *, batch, seqlen, n_heads, n_kv_heads, head_dim,
               hidden_dim, n_layers, eps, zero_idx):
    l = pl.program_id(0)
    B, S = batch, seqlen
    M = B * S
    hd = head_dim
    n_rep = n_heads // n_kv_heads
    q_dim = n_heads * hd
    kv_dim = n_kv_heads * hd

    # ---- token embedding (zero_idx handling), first grid step only ----
    @pl.when(l == 0)
    def _embed():
        tok = tok_ref[...]                                        # (M, 1) int32
        V = emb_ref.shape[0]
        iota_v = lax.broadcasted_iota(jnp.int32, (M, V), 1)
        onehot = jnp.where(tok == zero_idx, 0.0,
                           (jnp.maximum(tok, 0) == iota_v).astype(jnp.float32))
        h_ref[...] = jnp.dot(onehot, emb_ref[...],
                             preferred_element_type=jnp.float32)  # (M, D)

    x = h_ref[...]                                                # residual stream (M, D)

    # ---------------- attention ----------------
    xn = _rmsnorm(x, attn_norm_ref[...], eps)                     # (M, D)
    qkv = jnp.dot(xn, wqkv_ref[...],
                  preferred_element_type=jnp.float32)             # (M, q+2kv) = (M, 128)

    # Fused interleaved RoPE over [q | k | v(identity)]:
    #   rope(x)[2i]   = x[2i]*cos - x[2i+1]*sin
    #   rope(x)[2i+1] = x[2i+1]*cos + x[2i]*sin
    # sign/parity folded into cos/sin_even/sin_odd tables; v columns: cos=1, sin=0.
    sl = jnp.concatenate([qkv[:, 1:], qkv[:, :1]], axis=-1)       # x[j+1]
    sr = jnp.concatenate([qkv[:, -1:], qkv[:, :-1]], axis=-1)     # x[j-1]
    qkv = qkv * cos_ref[...] + sl * sine_ref[...] + sr * sino_ref[...]

    q = qkv[:, :q_dim].reshape(B, S, q_dim)
    k = qkv[:, q_dim:q_dim + kv_dim].reshape(B, S, kv_dim)
    v = qkv[:, q_dim + kv_dim:].reshape(B, S, kv_dim)

    qi = lax.broadcasted_iota(jnp.int32, (S, S), 0)
    ki = lax.broadcasted_iota(jnp.int32, (S, S), 1)
    causal = (ki <= qi)[None, :, :]                               # (1, S, S)
    scale = 1.0 / math.sqrt(hd)

    head_outs = []
    for h in range(n_heads):                                      # tiny static unroll
        hk = h // n_rep                                           # GQA group
        qh = q[:, :, h * hd:(h + 1) * hd]                         # (B, S, hd)
        kh = k[:, :, hk * hd:(hk + 1) * hd]
        vh = v[:, :, hk * hd:(hk + 1) * hd]
        s = jnp.einsum('bqd,bkd->bqk', qh, kh,
                       preferred_element_type=jnp.float32) * scale
        s = jnp.where(causal, s, -jnp.inf)
        m = jnp.max(s, axis=-1, keepdims=True)
        p = jnp.exp(s - m)
        p = p * pl.reciprocal(jnp.sum(p, axis=-1, keepdims=True), approx=True)
        head_outs.append(jnp.einsum('bqk,bkd->bqd', p, vh,
                                    preferred_element_type=jnp.float32))
    attn = jnp.concatenate(head_outs, axis=-1).reshape(M, q_dim)
    h1 = x + jnp.dot(attn, wo_ref[...], preferred_element_type=jnp.float32)

    # ---------------- SwiGLU feed-forward (fused gate/up matmul) ----------------
    hn = _rmsnorm(h1, ffn_norm_ref[...], eps)
    gu = jnp.dot(hn, w13_ref[...], preferred_element_type=jnp.float32)   # (M, 2*hidden)
    g = gu[:, :hidden_dim]
    u = gu[:, hidden_dim:]
    act = g * pl.reciprocal(1.0 + jnp.exp(-g), approx=True)              # silu(g)
    h_new = h1 + jnp.dot(act * u, w2_ref[...], preferred_element_type=jnp.float32)
    h_ref[...] = h_new                                            # carry residual in VMEM

    # ---- final RMSNorm + output projection, last grid step only ----
    @pl.when(l == n_layers - 1)
    def _head():
        h_last = h_new.reshape(B, S, h_new.shape[-1])[:, S - 1, :]       # (B, D)
        xn2 = _rmsnorm(h_last, final_norm_ref[...], eps)
        logits_ref[...] = jnp.dot(xn2, outw_ref[...],
                                  preferred_element_type=jnp.float32)    # (B, V)


# ------------------------------------ wrapper / plumbing ------------------------------------
def _rope_tables(freqs_cos, freqs_sin, B, S):
    """cos / signed-sin tables for the fused [q|k|v] RoPE, shaped (B*S, QKV_DIM)."""
    hd = HEAD_DIM
    cos = freqs_cos[:S]
    sin = freqs_sin[:S]
    cos_rep = jnp.repeat(cos[:, :hd // 2], 2, axis=-1)            # (S, hd)  c0,c0,c1,c1,...
    sin_rep = jnp.repeat(sin[:, :hd // 2], 2, axis=-1)
    parity = jnp.arange(hd) % 2
    sin_e = jnp.where(parity == 0, -sin_rep, 0.0)                 # even lanes: -sin
    sin_o = jnp.where(parity == 1, sin_rep, 0.0)                  # odd lanes:  +sin

    def widen(tab, v_fill):
        return jnp.concatenate(
            [jnp.tile(tab, (1, N_HEADS)),                         # q heads
             jnp.tile(tab, (1, N_KV_HEADS)),                      # k heads
             jnp.full((S, KV_DIM), v_fill, jnp.float32)],         # v: identity
            axis=-1)

    cos_t = widen(cos_rep, 1.0)
    sine_t = widen(sin_e, 0.0)
    sino_t = widen(sin_o, 0.0)
    return (jnp.tile(cos_t, (B, 1)),
            jnp.tile(sine_t, (B, 1)),
            jnp.tile(sino_t, (B, 1)))


def _stack_layer_weights(layers):
    """Stack per-layer weights along a leading layer axis, pre-transposed to (in, out)."""
    wqkv_t = jnp.stack([jnp.concatenate([lw['wq'], lw['wk'], lw['wv']], axis=0).T
                        for lw in layers])                        # (L, D, QKV_DIM)
    wo_t = jnp.stack([lw['wo'].T for lw in layers])               # (L, Q_DIM, D)
    w13_t = jnp.stack([jnp.concatenate([lw['w1'], lw['w3']], axis=0).T
                       for lw in layers])                         # (L, D, 2*HIDDEN)
    w2_t = jnp.stack([lw['w2'].T for lw in layers])               # (L, HIDDEN, D)
    attn_norm = jnp.stack([lw['attn_norm'] for lw in layers])     # (L, 1, D)
    ffn_norm = jnp.stack([lw['ffn_norm'] for lw in layers])       # (L, 1, D)
    return attn_norm, wqkv_t, wo_t, ffn_norm, w13_t, w2_t


def transformer_forward(tokens, params):
    B, S = tokens.shape
    M = B * S
    D, V, L = DIM, VOCAB, N_LAYERS

    cos_t, sine_t, sino_t = _rope_tables(params['freqs_cos'], params['freqs_sin'], B, S)
    attn_norm, wqkv_t, wo_t, ffn_norm, w13_t, w2_t = _stack_layer_weights(params['layers'])
    tok2 = tokens.reshape(M, 1).astype(jnp.int32)
    out_w_t = params['out_w'].T                                   # (D, V)

    kernel = partial(fwd_kernel, batch=B, seqlen=S, n_heads=N_HEADS,
                     n_kv_heads=N_KV_HEADS, head_dim=HEAD_DIM,
                     hidden_dim=HIDDEN_DIM, n_layers=L,
                     eps=NORM_EPS, zero_idx=ZERO_IDX)

    grid_spec = pltpu.PrefetchScalarGridSpec(
        num_scalar_prefetch=0,
        grid=(L,),
        in_specs=[
            pl.BlockSpec((M, 1), lambda l: (0, 0)),                        # tokens (flat)
            pl.BlockSpec((V, D), lambda l: (0, 0)),                        # embedding table
            pl.BlockSpec((M, QKV_DIM), lambda l: (0, 0)),                  # rope cos
            pl.BlockSpec((M, QKV_DIM), lambda l: (0, 0)),                  # rope sin (even, -)
            pl.BlockSpec((M, QKV_DIM), lambda l: (0, 0)),                  # rope sin (odd, +)
            pl.BlockSpec((None, 1, D), lambda l: (l, 0, 0)),               # attn_norm[l]
            pl.BlockSpec((None, D, QKV_DIM), lambda l: (l, 0, 0)),         # [wq|wk|wv]^T[l]
            pl.BlockSpec((None, Q_DIM, D), lambda l: (l, 0, 0)),           # wo^T[l]
            pl.BlockSpec((None, 1, D), lambda l: (l, 0, 0)),               # ffn_norm[l]
            pl.BlockSpec((None, D, 2 * HIDDEN_DIM), lambda l: (l, 0, 0)),  # [w1|w3]^T[l]
            pl.BlockSpec((None, HIDDEN_DIM, D), lambda l: (l, 0, 0)),      # w2^T[l]
            pl.BlockSpec((1, D), lambda l: (0, 0)),                        # final norm
            pl.BlockSpec((D, V), lambda l: (0, 0)),                        # output proj^T
        ],
        out_specs=pl.BlockSpec((B, V), lambda l: (0, 0)),                  # logits
        scratch_shapes=[pltpu.VMEM((M, D), jnp.float32)],                  # residual stream
    )

    return pl.pallas_call(
        kernel,
        out_shape=jax.ShapeDtypeStruct((B, V), jnp.float32),
        grid_spec=grid_spec,
        compiler_params=pltpu.CompilerParams(dimension_semantics=("arbitrary",)),
    )(tok2, params['emb'], cos_t, sine_t, sino_t,
      attn_norm, wqkv_t, wo_t, ffn_norm, w13_t, w2_t,
      params['final_norm'], out_w_t)


# ------------------------------------ params / rope precompute ------------------------------------
def precompute_freqs_cis(dim, end, theta=10000.0):
    inv = 1.0 / (theta ** (jnp.arange(0, dim, 2, dtype=jnp.float32) / dim))
    t = jnp.arange(end, dtype=jnp.float32)
    freqs = jnp.outer(t, inv)                        # (end, dim//2)
    emb = jnp.concatenate([freqs, freqs], axis=-1)   # (end, dim)
    return jnp.cos(emb), jnp.sin(emb)


def init_params(key):
    keys = jax.random.split(key, 3 + N_LAYERS)

    def w(k, shape, scale=0.05):
        return scale * jax.random.normal(k, shape, dtype=jnp.float32)

    fc, fs = precompute_freqs_cis(HEAD_DIM, MAX_SEQ_LEN, ROPE_BASE)
    params = {
        'emb': w(keys[0], (VOCAB, DIM)),
        'out_w': w(keys[1], (VOCAB, DIM)),
        'final_norm': jnp.ones((1, DIM), jnp.float32),
        'freqs_cos': fc,
        'freqs_sin': fs,
        'layers': [],
    }
    for i in range(N_LAYERS):
        lk = jax.random.split(keys[3 + i], 7)
        params['layers'].append({
            'attn_norm': jnp.ones((1, DIM), jnp.float32),
            'ffn_norm': jnp.ones((1, DIM), jnp.float32),
            'wq': w(lk[0], (N_HEADS * HEAD_DIM, DIM)),
            'wk': w(lk[1], (N_KV_HEADS * HEAD_DIM, DIM)),
            'wv': w(lk[2], (N_KV_HEADS * HEAD_DIM, DIM)),
            'wo': w(lk[3], (DIM, N_HEADS * HEAD_DIM)),
            'w1': w(lk[4], (HIDDEN_DIM, DIM)),
            'w2': w(lk[5], (DIM, HIDDEN_DIM)),
            'w3': w(lk[6], (HIDDEN_DIM, DIM)),
        })
    return params


# ------------------------------------ pure-JAX reference ------------------------------------
def _ref_rmsnorm(x, w, eps=NORM_EPS):
    var = jnp.mean(x * x, axis=-1, keepdims=True)
    return w * (x * lax.rsqrt(var + eps))


def _ref_rotate_half(x):
    x1 = x[..., 0::2]
    x2 = x[..., 1::2]
    return jnp.stack([-x2, x1], axis=-1).reshape(x.shape)


def ref_forward(tokens, params):
    B, S = tokens.shape
    hd = HEAD_DIM
    is_zero = tokens == ZERO_IDX
    h = params['emb'][jnp.maximum(tokens, 0)]
    h = jnp.where(is_zero[..., None], 0.0, h)
    cos = params['freqs_cos'][:S]
    sin = params['freqs_sin'][:S]
    cos_r = jnp.repeat(cos[:, :hd // 2], 2, axis=-1)[None, :, None, :]
    sin_r = jnp.repeat(sin[:, :hd // 2], 2, axis=-1)[None, :, None, :]
    mask = jnp.tril(jnp.ones((S, S), dtype=bool))
    for lw in params['layers']:
        xn = _ref_rmsnorm(h, lw['attn_norm'][0])
        q = (xn @ lw['wq'].T).reshape(B, S, N_HEADS, hd)
        k = (xn @ lw['wk'].T).reshape(B, S, N_KV_HEADS, hd)
        v = (xn @ lw['wv'].T).reshape(B, S, N_KV_HEADS, hd)
        q = q * cos_r + _ref_rotate_half(q) * sin_r
        k = k * cos_r + _ref_rotate_half(k) * sin_r
        q = q.transpose(0, 2, 1, 3)
        k = jnp.repeat(k.transpose(0, 2, 1, 3), N_REP, axis=1)
        v = jnp.repeat(v.transpose(0, 2, 1, 3), N_REP, axis=1)
        s = (q @ k.transpose(0, 1, 3, 2)) / math.sqrt(hd)
        s = jnp.where(mask[None, None], s, -jnp.inf)
        p = jax.nn.softmax(s, axis=-1)
        o = (p @ v).transpose(0, 2, 1, 3).reshape(B, S, N_HEADS * hd)
        h = h + o @ lw['wo'].T
        hn = _ref_rmsnorm(h, lw['ffn_norm'][0])
        g = hn @ lw['w1'].T
        u = hn @ lw['w3'].T
        h = h + (jax.nn.silu(g) * u) @ lw['w2'].T
    h_last = h[:, -1, :]
    hn = _ref_rmsnorm(h_last, params['final_norm'][0])
    return hn @ params['out_w'].T


# ------------------------------------ main ------------------------------------
if __name__ == "__main__":
    key = jax.random.PRNGKey(0)
    pkey, tkey = jax.random.split(key)
    params = init_params(pkey)

    tokens = jax.random.randint(tkey, (BATCH, SEQLEN), 0, VOCAB, dtype=jnp.int32)
    tokens = tokens.at[0, 0].set(ZERO_IDX)   # exercise the Embedding zero_idx=-1 path

    forward = jax.jit(transformer_forward)
    logits = jax.block_until_ready(forward(tokens, params))
    assert logits.shape == (BATCH, VOCAB)

    ref = ref_forward(tokens, params)
    np.testing.assert_allclose(np.asarray(logits), np.asarray(ref), rtol=2e-2, atol=2e-2)

    print("KERNEL_OK")
</pallas_src>

<mosaic_0001>
module attributes {stable_mosaic.version = 11 : i64} {
  func.func @fwd_kernel(%arg0: i32, %arg1: memref<16x1xi32, #tpu.memory_space<vmem>>, %arg2: memref<64x64xf32, #tpu.memory_space<vmem>>, %arg3: memref<16x128xf32, #tpu.memory_space<vmem>>, %arg4: memref<16x128xf32, #tpu.memory_space<vmem>>, %arg5: memref<16x128xf32, #tpu.memory_space<vmem>>, %arg6: memref<1x1x64xf32, #tpu.memory_space<vmem>>, %arg7: memref<1x64x128xf32, #tpu.memory_space<vmem>>, %arg8: memref<1x64x64xf32, #tpu.memory_space<vmem>>, %arg9: memref<1x1x64xf32, #tpu.memory_space<vmem>>, %arg10: memref<1x64x384xf32, #tpu.memory_space<vmem>>, %arg11: memref<1x192x64xf32, #tpu.memory_space<vmem>>, %arg12: memref<1x64xf32, #tpu.memory_space<vmem>>, %arg13: memref<64x64xf32, #tpu.memory_space<vmem>>, %arg14: memref<2x64xf32, #tpu.memory_space<vmem>>, %arg15: memref<16x64xf32, #tpu.memory_space<vmem>>) attributes {dimension_semantics = [#tpu.dimension_semantics<arbitrary>], iteration_bounds = array<i64: 2>, scalar_prefetch = 0 : i64, scratch_operands = 1 : i64, tpu.core_type = #tpu.core_type<tc>, window_params = [{pipeline_mode = #tpu.pipeline_mode<synchronous>, transform_indices = @transform_0, window_bounds = array<i64: 16, 1>}, {pipeline_mode = #tpu.pipeline_mode<synchronous>, transform_indices = @transform_1, window_bounds = array<i64: 64, 64>}, {pipeline_mode = #tpu.pipeline_mode<synchronous>, transform_indices = @transform_2, window_bounds = array<i64: 16, 128>}, {pipeline_mode = #tpu.pipeline_mode<synchronous>, transform_indices = @transform_3, window_bounds = array<i64: 16, 128>}, {pipeline_mode = #tpu.pipeline_mode<synchronous>, transform_indices = @transform_4, window_bounds = array<i64: 16, 128>}, {transform_indices = @transform_5, window_bounds = array<i64: 1, 1, 64>}, {transform_indices = @transform_6, window_bounds = array<i64: 1, 64, 128>}, {transform_indices = @transform_7, window_bounds = array<i64: 1, 64, 64>}, {transform_indices = @transform_8, window_bounds = array<i64: 1, 1, 64>}, {transform_indices = @transform_9, window_bounds = array<i64: 1, 64, 384>}, {transform_indices = @transform_10, window_bounds = array<i64: 1, 192, 64>}, {pipeline_mode = #tpu.pipeline_mode<synchronous>, transform_indices = @transform_11, window_bounds = array<i64: 1, 64>}, {pipeline_mode = #tpu.pipeline_mode<synchronous>, transform_indices = @transform_12, window_bounds = array<i64: 64, 64>}, {pipeline_mode = #tpu.pipeline_mode<synchronous>, transform_indices = @transform_13, window_bounds = array<i64: 2, 64>}]} {
    %c0_i32 = arith.constant 0 : i32
    %0 = arith.cmpi eq, %arg0, %c0_i32 : i32
    %1 = arith.extui %0 : i1 to i32
    %c0_i32_0 = arith.constant 0 : i32
    %2 = arith.cmpi ne, %1, %c0_i32_0 : i32
    scf.if %2 {
      %c0_64 = arith.constant 0 : index
      %c0_65 = arith.constant 0 : index
      %170 = vector.load %arg1[%c0_64, %c0_65] : memref<16x1xi32, #tpu.memory_space<vmem>>, vector<16x1xi32>
      %171 = tpu.iota {dimensions = array<i32: 1>} : vector<16x64xi32>
      %c-1_i32 = arith.constant -1 : i32
      %172 = vector.broadcast %c-1_i32 : i32 to vector<16x1xi32>
      %173 = arith.cmpi eq, %170, %172 : vector<16x1xi32>
      %c0_i32_66 = arith.constant 0 : i32
      %174 = vector.broadcast %c0_i32_66 : i32 to vector<16x1xi32>
      %175 = arith.maxsi %170, %174 : vector<16x1xi32>
      %176 = vector.broadcast %175 : vector<16x1xi32> to vector<16x64xi32>
      %177 = arith.cmpi eq, %176, %171 : vector<16x64xi32>
      %178 = arith.extui %177 : vector<16x64xi1> to vector<16x64xi32>
      %179 = arith.sitofp %178 : vector<16x64xi32> to vector<16x64xf32>
      %cst_67 = arith.constant 0.000000e+00 : f32
      %180 = vector.shape_cast %173 : vector<16x1xi1> to vector<16x1xi1>
      %181 = vector.broadcast %180 : vector<16x1xi1> to vector<16x64xi1>
      %182 = vector.broadcast %cst_67 : f32 to vector<16x64xf32>
      %183 = arith.select %181, %182, %179 : vector<16x64xi1>, vector<16x64xf32>
      %c0_68 = arith.constant 0 : index
      %c0_69 = arith.constant 0 : index
      %184 = vector.load %arg2[%c0_68, %c0_69] : memref<64x64xf32, #tpu.memory_space<vmem>>, vector<64x64xf32>
      %cst_70 = arith.constant dense<0.000000e+00> : vector<16x64xf32>
      %185 = tpu.matmul %183, %184, %cst_70 {dimension_numbers = #tpu.dot_dimension_numbers<[1], [0], [0], [1], [0, 0, 1, 1], [], []>} : vector<16x64xf32>, vector<64x64xf32>, vector<16x64xf32> -> vector<16x64xf32>
      %c0_71 = arith.constant 0 : index
      %c0_72 = arith.constant 0 : index
      %186 = vector.load %arg15[%c0_71, %c0_72] : memref<16x64xf32, #tpu.memory_space<vmem>>, vector<16x64xf32>
      tpu.vector_store %arg15[%c0_71, %c0_72], %185 {strides = array<i32>} : memref<16x64xf32, #tpu.memory_space<vmem>>, vector<16x64xf32>,
    } else {
    }
    %c0 = arith.constant 0 : index
    %c0_1 = arith.constant 0 : index
    %3 = vector.load %arg15[%c0, %c0_1] : memref<16x64xf32, #tpu.memory_space<vmem>>, vector<16x64xf32>
    %c0_2 = arith.constant 0 : index
    %c0_3 = arith.constant 0 : index
    %c0_4 = arith.constant 0 : index
    %4 = vector.load %arg6[%c0_2, %c0_3, %c0_4] : memref<1x1x64xf32, #tpu.memory_space<vmem>>, vector<1x1x64xf32>
    %5 = vector.shape_cast %4 : vector<1x1x64xf32> to vector<1x64xf32>
    %6 = arith.mulf %3, %3 : vector<16x64xf32>
    %cst = arith.constant dense<0.000000e+00> : vector<16xf32>
    %7 = vector.multi_reduction <add>, %6, %cst [1] : vector<16x64xf32> to vector<16xf32>
    %8 = vector.shape_cast %7 : vector<16xf32> to vector<16x1xf32>
    %cst_5 = arith.constant 6.400000e+01 : f32
    %9 = vector.broadcast %cst_5 : f32 to vector<16x1xf32>
    %10 = arith.divf %8, %9 : vector<16x1xf32>
    %cst_6 = arith.constant 9.99999974E-6 : f32
    %11 = vector.broadcast %cst_6 : f32 to vector<16x1xf32>
    %12 = arith.addf %10, %11 : vector<16x1xf32>
    %13 = math.rsqrt %12 : vector<16x1xf32>
    %14 = vector.broadcast %13 : vector<16x1xf32> to vector<16x64xf32>
    %15 = arith.mulf %3, %14 : vector<16x64xf32>
    %16 = vector.broadcast %5 : vector<1x64xf32> to vector<16x64xf32>
    %17 = arith.mulf %15, %16 : vector<16x64xf32>
    %c0_7 = arith.constant 0 : index
    %c0_8 = arith.constant 0 : index
    %c0_9 = arith.constant 0 : index
    %18 = vector.load %arg7[%c0_7, %c0_8, %c0_9] : memref<1x64x128xf32, #tpu.memory_space<vmem>>, vector<1x64x128xf32>
    %19 = vector.shape_cast %18 : vector<1x64x128xf32> to vector<64x128xf32>
    %cst_10 = arith.constant dense<0.000000e+00> : vector<16x128xf32>
    %20 = tpu.matmul %17, %19, %cst_10 {dimension_numbers = #tpu.dot_dimension_numbers<[1], [0], [0], [1], [0, 0, 1, 1], [], []>} : vector<16x64xf32>, vector<64x128xf32>, vector<16x128xf32> -> vector<16x128xf32>
    %21 = vector.extract_strided_slice %20 {offsets = [0, 1], sizes = [16, 127], strides = [1, 1]} : vector<16x128xf32> to vector<16x127xf32>
    %22 = vector.extract_strided_slice %20 {offsets = [0, 0], sizes = [16, 1], strides = [1, 1]} : vector<16x128xf32> to vector<16x1xf32>
    %23 = tpu.concatenate %21, %22 in 1 : vector<16x127xf32>, vector<16x1xf32> -> vector<16x128xf32>
    %24 = vector.extract_strided_slice %20 {offsets = [0, 127], sizes = [16, 1], strides = [1, 1]} : vector<16x128xf32> to vector<16x1xf32>
    %25 = vector.extract_strided_slice %20 {offsets = [0, 0], sizes = [16, 127], strides = [1, 1]} : vector<16x128xf32> to vector<16x127xf32>
    %26 = tpu.concatenate %24, %25 in 1 : vector<16x1xf32>, vector<16x127xf32> -> vector<16x128xf32>
    %c0_11 = arith.constant 0 : index
    %c0_12 = arith.constant 0 : index
    %27 = vector.load %arg3[%c0_11, %c0_12] : memref<16x128xf32, #tpu.memory_space<vmem>>, vector<16x128xf32>
    %28 = arith.mulf %20, %27 : vector<16x128xf32>
    %c0_13 = arith.constant 0 : index
    %c0_14 = arith.constant 0 : index
    %29 = vector.load %arg4[%c0_13, %c0_14] : memref<16x128xf32, #tpu.memory_space<vmem>>, vector<16x128xf32>
    %30 = arith.mulf %23, %29 : vector<16x128xf32>
    %31 = arith.addf %28, %30 : vector<16x128xf32>
    %c0_15 = arith.constant 0 : index
    %c0_16 = arith.constant 0 : index
    %32 = vector.load %arg5[%c0_15, %c0_16] : memref<16x128xf32, #tpu.memory_space<vmem>>, vector<16x128xf32>
    %33 = arith.mulf %26, %32 : vector<16x128xf32>
    %34 = arith.addf %31, %33 : vector<16x128xf32>
    %35 = vector.extract_strided_slice %34 {offsets = [0, 0], sizes = [16, 64], strides = [1, 1]} : vector<16x128xf32> to vector<16x64xf32>
    %36 = vector.shape_cast %35 : vector<16x64xf32> to vector<2x8x64xf32>
    %37 = vector.extract_strided_slice %34 {offsets = [0, 64], sizes = [16, 32], strides = [1, 1]} : vector<16x128xf32> to vector<16x32xf32>
    %38 = vector.shape_cast %37 : vector<16x32xf32> to vector<2x8x32xf32>
    %39 = vector.extract_strided_slice %34 {offsets = [0, 96], sizes = [16, 32], strides = [1, 1]} : vector<16x128xf32> to vector<16x32xf32>
    %40 = vector.shape_cast %39 : vector<16x32xf32> to vector<2x8x32xf32>
    %41 = tpu.iota {dimensions = array<i32: 0>} : vector<8x8xi32>
    %42 = tpu.iota {dimensions = array<i32: 1>} : vector<8x8xi32>
    %43 = arith.cmpi sle, %42, %41 : vector<8x8xi32>
    %44 = vector.shape_cast %43 : vector<8x8xi1> to vector<1x8x8xi1>
    %45 = vector.extract_strided_slice %36 {offsets = [0, 0, 0], sizes = [2, 8, 16], strides = [1, 1, 1]} : vector<2x8x64xf32> to vector<2x8x16xf32>
    %46 = vector.extract_strided_slice %38 {offsets = [0, 0, 0], sizes = [2, 8, 16], strides = [1, 1, 1]} : vector<2x8x32xf32> to vector<2x8x16xf32>
    %47 = vector.extract_strided_slice %40 {offsets = [0, 0, 0], sizes = [2, 8, 16], strides = [1, 1, 1]} : vector<2x8x32xf32> to vector<2x8x16xf32>
    "tpu.trace_start"() <{level = 10 : i32, message = "bqd,bkd->bqk"}> : () -> ()
    %cst_17 = arith.constant dense<0.000000e+00> : vector<2x8x8xf32>
    %48 = tpu.matmul %45, %46, %cst_17 {dimension_numbers = #tpu.dot_dimension_numbers<[2], [2], [1], [1], [0, 0, 0, 1, 1, 1], [0], [0]>} : vector<2x8x16xf32>, vector<2x8x16xf32>, vector<2x8x8xf32> -> vector<2x8x8xf32>
    "tpu.trace_stop"() : () -> ()
    %cst_18 = arith.constant 2.500000e-01 : f32
    %49 = vector.broadcast %cst_18 : f32 to vector<2x8x8xf32>
    %50 = arith.mulf %48, %49 : vector<2x8x8xf32>
    %cst_19 = arith.constant 0xFF800000 : f32
    %51 = vector.shape_cast %44 : vector<1x8x8xi1> to vector<1x8x8xi1>
    %52 = vector.broadcast %51 : vector<1x8x8xi1> to vector<2x8x8xi1>
    %53 = vector.broadcast %cst_19 : f32 to vector<2x8x8xf32>
    %54 = arith.select %52, %50, %53 : vector<2x8x8xi1>, vector<2x8x8xf32>
    %cst_20 = arith.constant dense<0xFF800000> : vector<2x8xf32>
    %55 = vector.multi_reduction <maximumf>, %54, %cst_20 [2] : vector<2x8x8xf32> to vector<2x8xf32>
    %56 = vector.shape_cast %55 : vector<2x8xf32> to vector<2x8x1xf32>
    %57 = vector.broadcast %56 : vector<2x8x1xf32> to vector<2x8x8xf32>
    %58 = arith.subf %54, %57 : vector<2x8x8xf32>
    %59 = math.exp %58 : vector<2x8x8xf32>
    %cst_21 = arith.constant dense<0.000000e+00> : vector<2x8xf32>
    %60 = vector.multi_reduction <add>, %59, %cst_21 [2] : vector<2x8x8xf32> to vector<2x8xf32>
    %61 = vector.shape_cast %60 : vector<2x8xf32> to vector<2x8x1xf32>
    %62 = tpu.reciprocal %61 {approx = true} : vector<2x8x1xf32> -> vector<2x8x1xf32>
    %63 = vector.broadcast %62 : vector<2x8x1xf32> to vector<2x8x8xf32>
    %64 = arith.mulf %59, %63 : vector<2x8x8xf32>
    "tpu.trace_start"() <{level = 10 : i32, message = "bqk,bkd->bqd"}> : () -> ()
    %cst_22 = arith.constant dense<0.000000e+00> : vector<2x8x16xf32>
    %65 = tpu.matmul %64, %47, %cst_22 {dimension_numbers = #tpu.dot_dimension_numbers<[2], [1], [1], [2], [0, 0, 0, 1, 1, 2], [0], [0]>} : vector<2x8x8xf32>, vector<2x8x16xf32>, vector<2x8x16xf32> -> vector<2x8x16xf32>
    "tpu.trace_stop"() : () -> ()
    %66 = vector.extract_strided_slice %36 {offsets = [0, 0, 16], sizes = [2, 8, 16], strides = [1, 1, 1]} : vector<2x8x64xf32> to vector<2x8x16xf32>
    %67 = vector.extract_strided_slice %38 {offsets = [0, 0, 0], sizes = [2, 8, 16], strides = [1, 1, 1]} : vector<2x8x32xf32> to vector<2x8x16xf32>
    %68 = vector.extract_strided_slice %40 {offsets = [0, 0, 0], sizes = [2, 8, 16], strides = [1, 1, 1]} : vector<2x8x32xf32> to vector<2x8x16xf32>
    "tpu.trace_start"() <{level = 10 : i32, message = "bqd,bkd->bqk"}> : () -> ()
    %cst_23 = arith.constant dense<0.000000e+00> : vector<2x8x8xf32>
    %69 = tpu.matmul %66, %67, %cst_23 {dimension_numbers = #tpu.dot_dimension_numbers<[2], [2], [1], [1], [0, 0, 0, 1, 1, 1], [0], [0]>} : vector<2x8x16xf32>, vector<2x8x16xf32>, vector<2x8x8xf32> -> vector<2x8x8xf32>
    "tpu.trace_stop"() : () -> ()
    %cst_24 = arith.constant 2.500000e-01 : f32
    %70 = vector.broadcast %cst_24 : f32 to vector<2x8x8xf32>
    %71 = arith.mulf %69, %70 : vector<2x8x8xf32>
    %cst_25 = arith.constant 0xFF800000 : f32
    %72 = vector.shape_cast %44 : vector<1x8x8xi1> to vector<1x8x8xi1>
    %73 = vector.broadcast %72 : vector<1x8x8xi1> to vector<2x8x8xi1>
    %74 = vector.broadcast %cst_25 : f32 to vector<2x8x8xf32>
    %75 = arith.select %73, %71, %74 : vector<2x8x8xi1>, vector<2x8x8xf32>
    %cst_26 = arith.constant dense<0xFF800000> : vector<2x8xf32>
    %76 = vector.multi_reduction <maximumf>, %75, %cst_26 [2] : vector<2x8x8xf32> to vector<2x8xf32>
    %77 = vector.shape_cast %76 : vector<2x8xf32> to vector<2x8x1xf32>
    %78 = vector.broadcast %77 : vector<2x8x1xf32> to vector<2x8x8xf32>
    %79 = arith.subf %75, %78 : vector<2x8x8xf32>
    %80 = math.exp %79 : vector<2x8x8xf32>
    %cst_27 = arith.constant dense<0.000000e+00> : vector<2x8xf32>
    %81 = vector.multi_reduction <add>, %80, %cst_27 [2] : vector<2x8x8xf32> to vector<2x8xf32>
    %82 = vector.shape_cast %81 : vector<2x8xf32> to vector<2x8x1xf32>
    %83 = tpu.reciprocal %82 {approx = true} : vector<2x8x1xf32> -> vector<2x8x1xf32>
    %84 = vector.broadcast %83 : vector<2x8x1xf32> to vector<2x8x8xf32>
    %85 = arith.mulf %80, %84 : vector<2x8x8xf32>
    "tpu.trace_start"() <{level = 10 : i32, message = "bqk,bkd->bqd"}> : () -> ()
    %cst_28 = arith.constant dense<0.000000e+00> : vector<2x8x16xf32>
    %86 = tpu.matmul %85, %68, %cst_28 {dimension_numbers = #tpu.dot_dimension_numbers<[2], [1], [1], [2], [0, 0, 0, 1, 1, 2], [0], [0]>} : vector<2x8x8xf32>, vector<2x8x16xf32>, vector<2x8x16xf32> -> vector<2x8x16xf32>
    "tpu.trace_stop"() : () -> ()
    %87 = vector.extract_strided_slice %36 {offsets = [0, 0, 32], sizes = [2, 8, 16], strides = [1, 1, 1]} : vector<2x8x64xf32> to vector<2x8x16xf32>
    %88 = vector.extract_strided_slice %38 {offsets = [0, 0, 16], sizes = [2, 8, 16], strides = [1, 1, 1]} : vector<2x8x32xf32> to vector<2x8x16xf32>
    %89 = vector.extract_strided_slice %40 {offsets = [0, 0, 16], sizes = [2, 8, 16], strides = [1, 1, 1]} : vector<2x8x32xf32> to vector<2x8x16xf32>
    "tpu.trace_start"() <{level = 10 : i32, message = "bqd,bkd->bqk"}> : () -> ()
    %cst_29 = arith.constant dense<0.000000e+00> : vector<2x8x8xf32>
    %90 = tpu.matmul %87, %88, %cst_29 {dimension_numbers = #tpu.dot_dimension_numbers<[2], [2], [1], [1], [0, 0, 0, 1, 1, 1], [0], [0]>} : vector<2x8x16xf32>, vector<2x8x16xf32>, vector<2x8x8xf32> -> vector<2x8x8xf32>
    "tpu.trace_stop"() : () -> ()
    %cst_30 = arith.constant 2.500000e-01 : f32
    %91 = vector.broadcast %cst_30 : f32 to vector<2x8x8xf32>
    %92 = arith.mulf %90, %91 : vector<2x8x8xf32>
    %cst_31 = arith.constant 0xFF800000 : f32
    %93 = vector.shape_cast %44 : vector<1x8x8xi1> to vector<1x8x8xi1>
    %94 = vector.broadcast %93 : vector<1x8x8xi1> to vector<2x8x8xi1>
    %95 = vector.broadcast %cst_31 : f32 to vector<2x8x8xf32>
    %96 = arith.select %94, %92, %95 : vector<2x8x8xi1>, vector<2x8x8xf32>
    %cst_32 = arith.constant dense<0xFF800000> : vector<2x8xf32>
    %97 = vector.multi_reduction <maximumf>, %96, %cst_32 [2] : vector<2x8x8xf32> to vector<2x8xf32>
    %98 = vector.shape_cast %97 : vector<2x8xf32> to vector<2x8x1xf32>
    %99 = vector.broadcast %98 : vector<2x8x1xf32> to vector<2x8x8xf32>
    %100 = arith.subf %96, %99 : vector<2x8x8xf32>
    %101 = math.exp %100 : vector<2x8x8xf32>
    %cst_33 = arith.constant dense<0.000000e+00> : vector<2x8xf32>
    %102 = vector.multi_reduction <add>, %101, %cst_33 [2] : vector<2x8x8xf32> to vector<2x8xf32>
    %103 = vector.shape_cast %102 : vector<2x8xf32> to vector<2x8x1xf32>
    %104 = tpu.reciprocal %103 {approx = true} : vector<2x8x1xf32> -> vector<2x8x1xf32>
    %105 = vector.broadcast %104 : vector<2x8x1xf32> to vector<2x8x8xf32>
    %106 = arith.mulf %101, %105 : vector<2x8x8xf32>
    "tpu.trace_start"() <{level = 10 : i32, message = "bqk,bkd->bqd"}> : () -> ()
    %cst_34 = arith.constant dense<0.000000e+00> : vector<2x8x16xf32>
    %107 = tpu.matmul %106, %89, %cst_34 {dimension_numbers = #tpu.dot_dimension_numbers<[2], [1], [1], [2], [0, 0, 0, 1, 1, 2], [0], [0]>} : vector<2x8x8xf32>, vector<2x8x16xf32>, vector<2x8x16xf32> -> vector<2x8x16xf32>
    "tpu.trace_stop"() : () -> ()
    %108 = vector.extract_strided_slice %36 {offsets = [0, 0, 48], sizes = [2, 8, 16], strides = [1, 1, 1]} : vector<2x8x64xf32> to vector<2x8x16xf32>
    %109 = vector.extract_strided_slice %38 {offsets = [0, 0, 16], sizes = [2, 8, 16], strides = [1, 1, 1]} : vector<2x8x32xf32> to vector<2x8x16xf32>
    %110 = vector.extract_strided_slice %40 {offsets = [0, 0, 16], sizes = [2, 8, 16], strides = [1, 1, 1]} : vector<2x8x32xf32> to vector<2x8x16xf32>
    "tpu.trace_start"() <{level = 10 : i32, message = "bqd,bkd->bqk"}> : () -> ()
    %cst_35 = arith.constant dense<0.000000e+00> : vector<2x8x8xf32>
    %111 = tpu.matmul %108, %109, %cst_35 {dimension_numbers = #tpu.dot_dimension_numbers<[2], [2], [1], [1], [0, 0, 0, 1, 1, 1], [0], [0]>} : vector<2x8x16xf32>, vector<2x8x16xf32>, vector<2x8x8xf32> -> vector<2x8x8xf32>
    "tpu.trace_stop"() : () -> ()
    %cst_36 = arith.constant 2.500000e-01 : f32
    %112 = vector.broadcast %cst_36 : f32 to vector<2x8x8xf32>
    %113 = arith.mulf %111, %112 : vector<2x8x8xf32>
    %cst_37 = arith.constant 0xFF800000 : f32
    %114 = vector.shape_cast %44 : vector<1x8x8xi1> to vector<1x8x8xi1>
    %115 = vector.broadcast %114 : vector<1x8x8xi1> to vector<2x8x8xi1>
    %116 = vector.broadcast %cst_37 : f32 to vector<2x8x8xf32>
    %117 = arith.select %115, %113, %116 : vector<2x8x8xi1>, vector<2x8x8xf32>
    %cst_38 = arith.constant dense<0xFF800000> : vector<2x8xf32>
    %118 = vector.multi_reduction <maximumf>, %117, %cst_38 [2] : vector<2x8x8xf32> to vector<2x8xf32>
    %119 = vector.shape_cast %118 : vector<2x8xf32> to vector<2x8x1xf32>
    %120 = vector.broadcast %119 : vector<2x8x1xf32> to vector<2x8x8xf32>
    %121 = arith.subf %117, %120 : vector<2x8x8xf32>
    %122 = math.exp %121 : vector<2x8x8xf32>
    %cst_39 = arith.constant dense<0.000000e+00> : vector<2x8xf32>
    %123 = vector.multi_reduction <add>, %122, %cst_39 [2] : vector<2x8x8xf32> to vector<2x8xf32>
    %124 = vector.shape_cast %123 : vector<2x8xf32> to vector<2x8x1xf32>
    %125 = tpu.reciprocal %124 {approx = true} : vector<2x8x1xf32> -> vector<2x8x1xf32>
    %126 = vector.broadcast %125 : vector<2x8x1xf32> to vector<2x8x8xf32>
    %127 = arith.mulf %122, %126 : vector<2x8x8xf32>
    "tpu.trace_start"() <{level = 10 : i32, message = "bqk,bkd->bqd"}> : () -> ()
    %cst_40 = arith.constant dense<0.000000e+00> : vector<2x8x16xf32>
    %128 = tpu.matmul %127, %110, %cst_40 {dimension_numbers = #tpu.dot_dimension_numbers<[2], [1], [1], [2], [0, 0, 0, 1, 1, 2], [0], [0]>} : vector<2x8x8xf32>, vector<2x8x16xf32>, vector<2x8x16xf32> -> vector<2x8x16xf32>
    "tpu.trace_stop"() : () -> ()
    %129 = tpu.concatenate %65, %86, %107, %128 in 2 : vector<2x8x16xf32>, vector<2x8x16xf32>, vector<2x8x16xf32>, vector<2x8x16xf32> -> vector<2x8x64xf32>
    %130 = vector.shape_cast %129 : vector<2x8x64xf32> to vector<16x64xf32>
    %c0_41 = arith.constant 0 : index
    %c0_42 = arith.constant 0 : index
    %c0_43 = arith.constant 0 : index
    %131 = vector.load %arg8[%c0_41, %c0_42, %c0_43] : memref<1x64x64xf32, #tpu.memory_space<vmem>>, vector<1x64x64xf32>
    %132 = vector.shape_cast %131 : vector<1x64x64xf32> to vector<64x64xf32>
    %cst_44 = arith.constant dense<0.000000e+00> : vector<16x64xf32>
    %133 = tpu.matmul %130, %132, %cst_44 {dimension_numbers = #tpu.dot_dimension_numbers<[1], [0], [0], [1], [0, 0, 1, 1], [], []>} : vector<16x64xf32>, vector<64x64xf32>, vector<16x64xf32> -> vector<16x64xf32>
    %134 = arith.addf %3, %133 : vector<16x64xf32>
    %c0_45 = arith.constant 0 : index
    %c0_46 = arith.constant 0 : index
    %c0_47 = arith.constant 0 : index
    %135 = vector.load %arg9[%c0_45, %c0_46, %c0_47] : memref<1x1x64xf32, #tpu.memory_space<vmem>>, vector<1x1x64xf32>
    %136 = vector.shape_cast %135 : vector<1x1x64xf32> to vector<1x64xf32>
    %137 = arith.mulf %134, %134 : vector<16x64xf32>
    %cst_48 = arith.constant dense<0.000000e+00> : vector<16xf32>
    %138 = vector.multi_reduction <add>, %137, %cst_48 [1] : vector<16x64xf32> to vector<16xf32>
    %139 = vector.shape_cast %138 : vector<16xf32> to vector<16x1xf32>
    %cst_49 = arith.constant 6.400000e+01 : f32
    %140 = vector.broadcast %cst_49 : f32 to vector<16x1xf32>
    %141 = arith.divf %139, %140 : vector<16x1xf32>
    %cst_50 = arith.constant 9.99999974E-6 : f32
    %142 = vector.broadcast %cst_50 : f32 to vector<16x1xf32>
    %143 = arith.addf %141, %142 : vector<16x1xf32>
    %144 = math.rsqrt %143 : vector<16x1xf32>
    %145 = vector.broadcast %144 : vector<16x1xf32> to vector<16x64xf32>
    %146 = arith.mulf %134, %145 : vector<16x64xf32>
    %147 = vector.broadcast %136 : vector<1x64xf32> to vector<16x64xf32>
    %148 = arith.mulf %146, %147 : vector<16x64xf32>
    %c0_51 = arith.constant 0 : index
    %c0_52 = arith.constant 0 : index
    %c0_53 = arith.constant 0 : index
    %149 = vector.load %arg10[%c0_51, %c0_52, %c0_53] : memref<1x64x384xf32, #tpu.memory_space<vmem>>, vector<1x64x384xf32>
    %150 = vector.shape_cast %149 : vector<1x64x384xf32> to vector<64x384xf32>
    %cst_54 = arith.constant dense<0.000000e+00> : vector<16x384xf32>
    %151 = tpu.matmul %148, %150, %cst_54 {dimension_numbers = #tpu.dot_dimension_numbers<[1], [0], [0], [1], [0, 0, 1, 1], [], []>} : vector<16x64xf32>, vector<64x384xf32>, vector<16x384xf32> -> vector<16x384xf32>
    %152 = vector.extract_strided_slice %151 {offsets = [0, 0], sizes = [16, 192], strides = [1, 1]} : vector<16x384xf32> to vector<16x192xf32>
    %153 = vector.extract_strided_slice %151 {offsets = [0, 192], sizes = [16, 192], strides = [1, 1]} : vector<16x384xf32> to vector<16x192xf32>
    %cst_55 = arith.constant 0.000000e+00 : f32
    %154 = vector.broadcast %cst_55 : f32 to vector<16x192xf32>
    %155 = arith.subf %154, %152 : vector<16x192xf32>
    %156 = math.exp %155 : vector<16x192xf32>
    %cst_56 = arith.constant 1.000000e+00 : f32
    %157 = vector.broadcast %cst_56 : f32 to vector<16x192xf32>
    %158 = arith.addf %157, %156 : vector<16x192xf32>
    %159 = tpu.reciprocal %158 {approx = true} : vector<16x192xf32> -> vector<16x192xf32>
    %160 = arith.mulf %152, %159 : vector<16x192xf32>
    %161 = arith.mulf %160, %153 : vector<16x192xf32>
    %c0_57 = arith.constant 0 : index
    %c0_58 = arith.constant 0 : index
    %c0_59 = arith.constant 0 : index
    %162 = vector.load %arg11[%c0_57, %c0_58, %c0_59] : memref<1x192x64xf32, #tpu.memory_space<vmem>>, vector<1x192x64xf32>
    %163 = vector.shape_cast %162 : vector<1x192x64xf32> to vector<192x64xf32>
    %cst_60 = arith.constant dense<0.000000e+00> : vector<16x64xf32>
    %164 = tpu.matmul %161, %163, %cst_60 {dimension_numbers = #tpu.dot_dimension_numbers<[1], [0], [0], [1], [0, 0, 1, 1], [], []>} : vector<16x192xf32>, vector<192x64xf32>, vector<16x64xf32> -> vector<16x64xf32>
    %165 = arith.addf %134, %164 : vector<16x64xf32>
    %c0_61 = arith.constant 0 : index
    %c0_62 = arith.constant 0 : index
    %166 = vector.load %arg15[%c0_61, %c0_62] : memref<16x64xf32, #tpu.memory_space<vmem>>, vector<16x64xf32>
    tpu.vector_store %arg15[%c0_61, %c0_62], %165 {strides = array<i32>} : memref<16x64xf32, #tpu.memory_space<vmem>>, vector<16x64xf32>,
    %c1_i32 = arith.constant 1 : i32
    %167 = arith.cmpi eq, %arg0, %c1_i32 : i32
    %168 = arith.extui %167 : i1 to i32
    %c0_i32_63 = arith.constant 0 : i32
    %169 = arith.cmpi ne, %168, %c0_i32_63 : i32
    scf.if %169 {
      %170 = vector.shape_cast %165 : vector<16x64xf32> to vector<2x8x64xf32>
      %171 = vector.extract_strided_slice %170 {offsets = [0, 7, 0], sizes = [2, 1, 64], strides = [1, 1, 1]} : vector<2x8x64xf32> to vector<2x1x64xf32>
      %172 = vector.shape_cast %171 : vector<2x1x64xf32> to vector<2x64xf32>
      %c0_64 = arith.constant 0 : index
      %c0_65 = arith.constant 0 : index
      %173 = vector.load %arg12[%c0_64, %c0_65] : memref<1x64xf32, #tpu.memory_space<vmem>>, vector<1x64xf32>
      %174 = arith.mulf %172, %172 : vector<2x64xf32>
      %cst_66 = arith.constant dense<0.000000e+00> : vector<2xf32>
      %175 = vector.multi_reduction <add>, %174, %cst_66 [1] : vector<2x64xf32> to vector<2xf32>
      %176 = vector.shape_cast %175 : vector<2xf32> to vector<2x1xf32>
      %cst_67 = arith.constant 6.400000e+01 : f32
      %177 = vector.broadcast %cst_67 : f32 to vector<2x1xf32>
      %178 = arith.divf %176, %177 : vector<2x1xf32>
      %cst_68 = arith.constant 9.99999974E-6 : f32
      %179 = vector.broadcast %cst_68 : f32 to vector<2x1xf32>
      %180 = arith.addf %178, %179 : vector<2x1xf32>
      %181 = math.rsqrt %180 : vector<2x1xf32>
      %182 = vector.broadcast %181 : vector<2x1xf32> to vector<2x64xf32>
      %183 = arith.mulf %172, %182 : vector<2x64xf32>
      %184 = vector.broadcast %173 : vector<1x64xf32> to vector<2x64xf32>
      %185 = arith.mulf %183, %184 : vector<2x64xf32>
      %c0_69 = arith.constant 0 : index
      %c0_70 = arith.constant 0 : index
      %186 = vector.load %arg13[%c0_69, %c0_70] : memref<64x64xf32, #tpu.memory_space<vmem>>, vector<64x64xf32>
      %cst_71 = arith.constant dense<0.000000e+00> : vector<2x64xf32>
      %187 = tpu.matmul %185, %186, %cst_71 {dimension_numbers = #tpu.dot_dimension_numbers<[1], [0], [0], [1], [0, 0, 1, 1], [], []>} : vector<2x64xf32>, vector<64x64xf32>, vector<2x64xf32> -> vector<2x64xf32>
      %c0_72 = arith.constant 0 : index
      %c0_73 = arith.constant 0 : index
      %188 = vector.load %arg14[%c0_72, %c0_73] : memref<2x64xf32, #tpu.memory_space<vmem>>, vector<2x64xf32>
      tpu.vector_store %arg14[%c0_72, %c0_73], %187 {strides = array<i32>} : memref<2x64xf32, #tpu.memory_space<vmem>>, vector<2x64xf32>,
    } else {
    }
    return
  }
  func.func @transform_0(%arg0: i32) -> (i32, i32) {
    %c0_i32 = arith.constant 0 : i32
    %c0_i32_0 = arith.constant 0 : i32
    %c0_i32_1 = arith.constant 0 : i32
    return %c0_i32, %c0_i32_0 : i32, i32
  }
  func.func @transform_1(%arg0: i32) -> (i32, i32) {
    %c0_i32 = arith.constant 0 : i32
    %c0_i32_0 = arith.constant 0 : i32
    %c0_i32_1 = arith.constant 0 : i32
    return %c0_i32, %c0_i32_0 : i32, i32
  }
  func.func @transform_2(%arg0: i32) -> (i32, i32) {
    %c0_i32 = arith.constant 0 : i32
    %c0_i32_0 = arith.constant 0 : i32
    %c0_i32_1 = arith.constant 0 : i32
    return %c0_i32, %c0_i32_0 : i32, i32
  }
  func.func @transform_3(%arg0: i32) -> (i32, i32) {
    %c0_i32 = arith.constant 0 : i32
    %c0_i32_0 = arith.constant 0 : i32
    %c0_i32_1 = arith.constant 0 : i32
    return %c0_i32, %c0_i32_0 : i32, i32
  }
  func.func @transform_4(%arg0: i32) -> (i32, i32) {
    %c0_i32 = arith.constant 0 : i32
    %c0_i32_0 = arith.constant 0 : i32
    %c0_i32_1 = arith.constant 0 : i32
    return %c0_i32, %c0_i32_0 : i32, i32
  }
  func.func @transform_5(%arg0: i32) -> (i32, i32, i32) {
    %c0_i32 = arith.constant 0 : i32
    %c0_i32_0 = arith.constant 0 : i32
    %c0_i32_1 = arith.constant 0 : i32
    return %arg0, %c0_i32, %c0_i32_0 : i32, i32, i32
  }
  func.func @transform_6(%arg0: i32) -> (i32, i32, i32) {
    %c0_i32 = arith.constant 0 : i32
    %c0_i32_0 = arith.constant 0 : i32
    %c0_i32_1 = arith.constant 0 : i32
    return %arg0, %c0_i32, %c0_i32_0 : i32, i32, i32
  }
  func.func @transform_7(%arg0: i32) -> (i32, i32, i32) {
    %c0_i32 = arith.constant 0 : i32
    %c0_i32_0 = arith.constant 0 : i32
    %c0_i32_1 = arith.constant 0 : i32
    return %arg0, %c0_i32, %c0_i32_0 : i32, i32, i32
  }
  func.func @transform_8(%arg0: i32) -> (i32, i32, i32) {
    %c0_i32 = arith.constant 0 : i32
    %c0_i32_0 = arith.constant 0 : i32
    %c0_i32_1 = arith.constant 0 : i32
    return %arg0, %c0_i32, %c0_i32_0 : i32, i32, i32
  }
  func.func @transform_9(%arg0: i32) -> (i32, i32, i32) {
    %c0_i32 = arith.constant 0 : i32
    %c0_i32_0 = arith.constant 0 : i32
    %c0_i32_1 = arith.constant 0 : i32
    return %arg0, %c0_i32, %c0_i32_0 : i32, i32, i32
  }
  func.func @transform_10(%arg0: i32) -> (i32, i32, i32) {
    %c0_i32 = arith.constant 0 : i32
    %c0_i32_0 = arith.constant 0 : i32
    %c0_i32_1 = arith.constant 0 : i32
    return %arg0, %c0_i32, %c0_i32_0 : i32, i32, i32
  }
  func.func @transform_11(%arg0: i32) -> (i32, i32) {
    %c0_i32 = arith.constant 0 : i32
    %c0_i32_0 = arith.constant 0 : i32
    %c0_i32_1 = arith.constant 0 : i32
    return %c0_i32, %c0_i32_0 : i32, i32
  }
  func.func @transform_12(%arg0: i32) -> (i32, i32) {
    %c0_i32 = arith.constant 0 : i32
    %c0_i32_0 = arith.constant 0 : i32
    %c0_i32_1 = arith.constant 0 : i32
    return %c0_i32, %c0_i32_0 : i32, i32
  }
  func.func @transform_13(%arg0: i32) -> (i32, i32) {
    %c0_i32 = arith.constant 0 : i32
    %c0_i32_0 = arith.constant 0 : i32
    %c0_i32_1 = arith.constant 0 : i32
    return %c0_i32, %c0_i32_0 : i32, i32
  }
}

</mosaic_0001>

<bundles_post_ra>
// kernel: tile.55
= control target key start
LH: loop header
LB: loop body
LE: loop exit
PB: predicated region body
PF: predicated region fallthrough
CT: control target
= control target key end

     0   :  { %vm36_vm0 = vcmask 1047556   ;;  %s81_s22 = smov 16   ;;  %s82_s23 = smov 32   ;;  %vm38_vm1 = vcmask 130048   ;;  %vm48_vm2 = vcmask 523648   ;;  %vm58_vm3 = vcmask 392448   ;;  %s133_s0 = inlined_call_operand.vmem [shape: f32[8,4,16], index: 0, kind: input, shape index: {}]   ;;  %s134_s1 = inlined_call_operand.vmem [shape: f32[8,64], index: 1, kind: output, shape index: {}]  }
   0x1   :  { %v70_v0 = vld [vmem:[%s133_s0 + $0x1c] sm:$0xf]  ;;  %v71_v1 = vld [vmem:[%s133_s0 + $0x18] sm:$0xf]  ;;  %v72_v2 = vld [vmem:[%s133_s0 + $0x14] sm:$0xf] }
   0x2   :  { %7 = vst [vmem:[#allocation0 + $0x38] sm:$0xf] %v70_v0  ;;  %v73_v3 = vld [vmem:[%s133_s0 + $0x10] sm:$0xf]  ;;  %v74_v4 = vld [vmem:[%s133_s0 + $0xc] sm:$0xf] }
   0x3   :  { %11 = vst [vmem:[#allocation0 + $0x30] sm:$0xf] %v71_v1  ;;  %v75_v5 = vld [vmem:[%s133_s0 + $0x8] sm:$0xf]  ;;  %v76_v6 = vld [vmem:[%s133_s0 + $0x4] sm:$0xf] }
   0x4   :  { %15 = vst [vmem:[#allocation0 + $0x28] sm:$0xf] %v72_v2  ;;  %v32_v7 = vld [vmem:[%s133_s0] sm:$0xf]  ;;  %s80_s0 = smov 48   ;;  %vm68_vm4 = vcmask 261248  }
   0x5   :  { %19 = vst [vmem:[#allocation0 + $0x20] sm:$0xf] %v73_v3 }
   0x6   :  { %23 = vst [vmem:[#allocation0 + $0x18] sm:$0xf] %v74_v4 }
   0x7   :  { %27 = vst [vmem:[#allocation0 + $0x10] sm:$0xf] %v75_v5 }
   0x8   :  { %31 = vst [vmem:[#allocation0 + $0x8] sm:$0xf] %v76_v6 }
   0x9   :  { %33 = vst [vmem:[#allocation0] sm:$0xf] %v32_v7 }
   0xc   :  { %v43_v8 = vld [vmem:[#allocation0 + $0x3] ss:$8 sm:$0xf0]   ;;  %v63_v9 = vld [vmem:[#allocation0 + $0x1] ss:$8 sm:$0xf0]  }
   0xd   :  { %v53_v15 = vld [vmem:[#allocation0 + $0x2] ss:$8 sm:$0xf0]   ;;  %v35_v18 = vld [vmem:[#allocation0] ss:$8 sm:$0xf0]  }
  0x10   :  { %v41_v10 = vld [vmem:[#allocation0 + $0x3] ss:$8 sm:$0xf]   ;;  %v61_v12 = vld [vmem:[#allocation0 + $0x1] ss:$8 sm:$0xf]  }
  0x11   :  { %v45_v11 = vsel %vm36_vm0, %v43_v8, %v41_v10  ;;  %v65_v13 = vsel %vm36_vm0, %v63_v9, %v61_v12  ;;  %v51_v14 = vld [vmem:[#allocation0 + $0x2] ss:$8 sm:$0xf]   ;;  %v34_v17 = vld [vmem:[#allocation0] ss:$8 sm:$0xf]  }
  0x12   :  { %46 = vrot.lane.b32.xlu0 %v45_v11, %s80_s0  ;;  %66 = vrot.lane.b32.xlu1 %v65_v13, %s81_s22  ;;  %v55_v16 = vsel %vm36_vm0, %v53_v15, %v51_v14  ;;  %v37_v19 = vsel %vm36_vm0, %v35_v18, %v34_v17 }
  0x13   :  { %39 = vst.msk [vmem:[%s134_s1] sm:$0xff] %vm38_vm1, %v37_v19  }
  0x1a   :  { %56 = vrot.lane.b32.xlu0 %v55_v16, %s82_s23 }
  0x84   :  { %v47_v20 = vpop.permute.xlu0 %46   ;;  %v67_v21 = vpop.permute.xlu1 %66  }
  0x85   :  { %49 = vst.msk [vmem:[%s134_s1] sm:$0xff] %vm48_vm2, %v47_v20  }
  0x8c   :  { %v57_v22 = vpop.permute.xlu0 %56  }
  0x8d   :  { %59 = vst.msk [vmem:[%s134_s1] sm:$0xff] %vm58_vm3, %v57_v22  }
  0x8e   :  { %69 = vst.msk [vmem:[%s134_s1] sm:$0xff] %vm68_vm4, %v67_v21  }

// kernel: tile.60
= control target key start
LH: loop header
LB: loop body
LE: loop exit
PB: predicated region body
PF: predicated region fallthrough
CT: control target
= control target key end

     0   :  { %vm36_vm0 = vcmask 1047556   ;;  %vm38_vm1 = vcmask 130048   ;;  %vm48_vm2 = vcmask 261248   ;;  %s99_s0 = inlined_call_operand.vmem [shape: f32[8,2,16], index: 0, kind: input, shape index: {}]   ;;  %s100_s1 = inlined_call_operand.vmem [shape: f32[8,32], index: 1, kind: output, shape index: {}]  }
   0x1   :  { %v50_v0 = vld [vmem:[%s99_s0 + $0xe] sm:$0x3]  ;;  %v51_v1 = vld [vmem:[%s99_s0 + $0xc] sm:$0x3]  ;;  %v52_v2 = vld [vmem:[%s99_s0 + $0xa] sm:$0x3] }
   0x2   :  { %7 = vst [vmem:[#allocation0 + $0x38] sm:$0x3] %v50_v0  ;;  %v53_v3 = vld [vmem:[%s99_s0 + $0x8] sm:$0x3]  ;;  %v54_v4 = vld [vmem:[%s99_s0 + $0x6] sm:$0x3] }
   0x3   :  { %11 = vst [vmem:[#allocation0 + $0x30] sm:$0x3] %v51_v1  ;;  %v55_v5 = vld [vmem:[%s99_s0 + $0x4] sm:$0x3]  ;;  %v56_v6 = vld [vmem:[%s99_s0 + $0x2] sm:$0x3] }
   0x4   :  { %15 = vst [vmem:[#allocation0 + $0x28] sm:$0x3] %v52_v2  ;;  %v32_v7 = vld [vmem:[%s99_s0] sm:$0x3]  ;;  %s58_s0 = smov 16  }
   0x5   :  { %19 = vst [vmem:[#allocation0 + $0x20] sm:$0x3] %v53_v3 }
   0x6   :  { %23 = vst [vmem:[#allocation0 + $0x18] sm:$0x3] %v54_v4 }
   0x7   :  { %27 = vst [vmem:[#allocation0 + $0x10] sm:$0x3] %v55_v5 }
   0x8   :  { %31 = vst [vmem:[#allocation0 + $0x8] sm:$0x3] %v56_v6 }
   0x9   :  { %33 = vst [vmem:[#allocation0] sm:$0x3] %v32_v7 }
   0xc   :  { %v35_v8 = vld [vmem:[#allocation0] ss:$8 sm:$0xf0]   ;;  %v43_v9 = vld [vmem:[#allocation0 + $0x1] ss:$8 sm:$0xf0]  }
  0x10   :  { %v34_v10 = vld [vmem:[#allocation0] ss:$8 sm:$0xf]   ;;  %v41_v11 = vld [vmem:[#allocation0 + $0x1] ss:$8 sm:$0xf]  }
  0x11   :  { %v37_v12 = vsel %vm36_vm0, %v35_v8, %v34_v10  ;;  %v45_v13 = vsel %vm36_vm0, %v43_v9, %v41_v11 }
  0x12   :  { %46 = vrot.lane.b32.xlu0 %v45_v13, %s58_s0  ;;  %39 = vst.msk [vmem:[%s100_s1] sm:$0xff] %vm38_vm1, %v37_v12  }
  0x84   :  { %v47_v14 = vpop.permute.xlu0 %46  }
  0x85   :  { %49 = vst.msk [vmem:[%s100_s1] sm:$0xff] %vm48_vm2, %v47_v14  }

// kernel: transformer_forward.1
= control target key start
LH: loop header
LB: loop body
LE: loop exit
PB: predicated region body
PF: predicated region fallthrough
CT: control target
= control target key end

     0   :  { %s2430_s0 = inlined_call_operand.vmem [shape: s32[16,1], index: 0, kind: input, shape index: {}]   ;;  %s2431_s1 = inlined_call_operand.vmem [shape: f32[64,64], index: 1, kind: input, shape index: {}]   ;;  %s2432_s2 = inlined_call_operand.vmem [shape: f32[16,128], index: 2, kind: input, shape index: {}]   ;;  %s2433_s3 = inlined_call_operand.vmem [shape: f32[16,128], index: 3, kind: input, shape index: {}]   ;;  %s2434_s4 = inlined_call_operand.vmem [shape: f32[16,128], index: 4, kind: input, shape index: {}]   ;;  %s2435_s5 = inlined_call_operand.vmem [shape: f32[2,1,64], index: 5, kind: input, shape index: {}]   ;;  %s2436_s6 = inlined_call_operand.vmem [shape: f32[2,64,128], index: 6, kind: input, shape index: {}]   ;;  %s2437_s7 = inlined_call_operand.vmem [shape: f32[2,64,64], index: 7, kind: input, shape index: {}]   ;;  %s2438_s8 = inlined_call_operand.vmem [shape: f32[2,1,64], index: 8, kind: input, shape index: {}]   ;;  %s2439_s9 = inlined_call_operand.vmem [shape: f32[2,64,384], index: 9, kind: input, shape index: {}]   ;;  %s2440_s10 = inlined_call_operand.vmem [shape: f32[2,192,64], index: 10, kind: input, shape index: {}]   ;;  %s2441_s11 = inlined_call_operand.vmem [shape: f32[1,64], index: 11, kind: input, shape index: {}]   ;;  %s2442_s12 = inlined_call_operand.vmem [shape: f32[64,64], index: 12, kind: input, shape index: {}]   ;;  %s2443_s13 = inlined_call_operand.hbm [shape: f32[2,64], index: 13, kind: output, shape index: {}]  }
   0x1   :  { %2445 = sst [smem:[#allocation7_spill]] %s2443_s13 }
   0x2   :  { %18 = vsyncpa [#allocation4], 0  ;;  %s2042_s25 = smov 0  }
   0x3 LB: > { %2446 = sst [smem:[#allocation6_spill]] %s1957_s25  ;;  %s2048_s26 = sadd.s32 4294967295, %s1957_s25   ;;  %s1957_s25 = sphi %s2042_s25, %s24_s25  }
   0x4   : > { %p1760_p0 = scmp.ge.s32.totalorder %s1957_s25, 1  ;;  %p429_p1 = scmp.lt.s32.totalorder %s1957_s25, 3 }
   0x6   : > { %p430_p2 = pnand %p1760_p0, %p429_p1 }
   0x7   : > { %p489_p3 = scmp.lt.s32.totalorder (!%p430_p2), %s2048_s26, 1  ;;  %p1767_p4 = scmp.ne.s32.totalorder (!%p430_p2), %s2048_s26, 0 }
   0x8   : > { %433 = sbr.rel (%p430_p2) target bundleno = 3167 (0xc5f), region = 72 }
   0xd   : > { %s2054_s27 = scalar_select %p489_p3, %s2048_s26, 1 }
   0xf   : > { %s1814_s14 = sshll.u32 %s2054_s27, 6  ;;  %s504_s23 = scalar_lea.vmem %s2438_s8, %s2054_s27 }
  0x10   : > { %s2064_s17 = scalar_lea.vmem %s2436_s6, %s1814_s14  ;;  %s2069_s20 = scalar_lea.vmem %s2437_s7, %s1814_s14 }
  0x11   : > { %s1824_s24 = smul.u32 192, %s2054_s27 }
  0x12   : > { %518 = sbr.rel (%p1767_p4) target bundleno = 279 (0x117), region = 76 }
  0x13   : > { %s2079_s30 = scalar_lea.vmem %s2439_s9, %s1824_s24  ;;  %s2084_s15 = scalar_lea.vmem %s2440_s10, %s1824_s24 }
  0x17   : > { %v519_v0 = vld [vmem:[%s2430_s0] sm:$0xff]  ;;  %v560_v1 = vld [vmem:[%s2431_s1 + $0x38] sm:$0xff]  ;;  %v1959_v2 = vmov 0   ;;  %v559_v3 = vld [vmem:[%s2431_s1 + $0x30] sm:$0xff]  ;;  %v521_v15 = vlaneseq  ;;  %vm561_vm6 = vcmask 523264   ;;  %v1960_v19 = vmov 0.0  }
  0x18   : > { %1853 = vset.pattern.permute.xlu1 %v1959_v2  ;;  %1852 = vset.pattern.permute.xlu0 %v1959_v2  ;;  %vm525_vm0 = vcmp.gt.s32.totalorder %v519_v0, 0  ;;  %vm523_vm1 = vcmp.eq.s32.totalorder %v519_v0, 4294967295  ;;  %v520_v6 = vld [vmem:[%s2430_s0 + $0x8] sm:$0xff]  ;;  %v557_v8 = vld [vmem:[%s2431_s1 + $0x20] sm:$0xff]  ;;  %v556_v9 = vld [vmem:[%s2431_s1 + $0x18] sm:$0xff] }
  0x19   : > { %v526_v4 = vsel %vm525_vm0, %v519_v0, 0  ;;  %v541_v5 = vsel %vm523_vm1, 1, %v1959_v2  ;;  %576 = vmatpush.msra.mxu0 %v560_v1  ;;  %1816 = vmatpush.msra.mxu1 %v560_v1  ;;  %v558_v7 = vld [vmem:[%s2431_s1 + $0x28] sm:$0xff]  ;;  %vm527_vm2 = vcmp.gt.s32.totalorder %v520_v6, 0  ;;  %vm524_vm3 = vcmp.eq.s32.totalorder %v520_v6, 4294967295  ;;  %v555_v12 = vld [vmem:[%s2431_s1 + $0x10] sm:$0xff] }
  0x1a   : > { %530 = vperm.xlu0 %1852, %v526_v4   ;;  %544 = vperm.xlu1 %1853, %v541_v5   ;;  %v528_v10 = vsel %vm527_vm2, %v520_v6, 0  ;;  %v542_v11 = vsel %vm524_vm3, 1, %v1959_v2  ;;  %v554_v13 = vld [vmem:[%s2431_s1 + $0x8] sm:$0xff]  ;;  %v553_v14 = vld [vmem:[%s2431_s1] sm:$0xff]  ;;  %v522_v16 = vand.u32 127, %v521_v15 }
  0x1b   : > { %577 = vmatpush.msra.mxu0 %v559_v3  ;;  %1817 = vmatpush.msra.mxu1 %v559_v3 }
  0x1d   : > { %578 = vmatpush.msra.mxu0 %v558_v7  ;;  %1818 = vmatpush.msra.mxu1 %v558_v7 }
  0x1f   : > { %579 = vmatpush.msra.mxu0 %v557_v8  ;;  %1819 = vmatpush.msra.mxu1 %v557_v8 }
  0x21   : > { %580 = vmatpush.msra.mxu0 %v556_v9  ;;  %1820 = vmatpush.msra.mxu1 %v556_v9 }
  0x22   : > { %533 = vperm.xlu0 %1852, %v528_v10   ;;  %547 = vperm.xlu1 %1853, %v542_v11  }
  0x23   : > { %581 = vmatpush.msra.mxu0 %v555_v12  ;;  %1821 = vmatpush.msra.mxu1 %v555_v12 }
  0x25   : > { %582 = vmatpush.msra.mxu0 %v554_v13  ;;  %1822 = vmatpush.msra.mxu1 %v554_v13 }
  0x27   : > { %583 = vmatpush.msra.mxu0 %v553_v14  ;;  %1823 = vmatpush.msra.mxu1 %v553_v14 }
  0x8c   : > { %v531_v17 = vpop.permute.xlu0 %530  ;;  %v545_v18 = vpop.permute.xlu1 %544 }
  0x8d   : > { %vm535_vm4 = vcmp.eq.s32.totalorder %v531_v17, %v522_v16  ;;  %vm549_vm5 = vcmp.eq.s32.totalorder %v545_v18, 1 }
  0x8e   : > { %v1768_v20 = vsel %vm535_vm4, 1.0, %v1960_v19 }
  0x8f   : > { %v551_v21 = vsel %vm549_vm5, 0.0, %v1768_v20 }
  0x90   : > { %1770 = vmatmul.msk.f32.vlgmr.msra.gmra.mxu0 %vm561_vm6, %v551_v21 }
  0x94   : > { %v534_v22 = vpop.permute.xlu0 %533  ;;  %v548_v23 = vpop.permute.xlu1 %547 }
  0x95   : > { %vm536_vm7 = vcmp.eq.s32.totalorder %v534_v22, %v522_v16  ;;  %vm550_vm8 = vcmp.eq.s32.totalorder %v548_v23, 1 }
  0x96   : > { %v1769_v24 = vsel %vm536_vm7, 1.0, %v1960_v19 }
  0x97   : > { %v552_v25 = vsel %vm550_vm8, 0.0, %v1769_v24 }
  0x98   : > { %1771 = vmatmul.msk.f32.vlgmr.msra.gmra.mxu1 %vm561_vm6, %v552_v25 }
 0x10d   : > { %v585_v26 = vpop.f32.mrf.mxu0 }
 0x10e   : > { %591 = vst.msk [vmem:[#allocation2] sm:$0xff] %vm561_vm6, %v585_v26 }
 0x115   : > { %v588_v27 = vpop.f32.mrf.mxu1 }
 0x116   : > { %592 = vst.msk [vmem:[#allocation2 + $0x8] sm:$0xff] %vm561_vm6, %v588_v27 }
 0x117 PF: > { %v2117_v28 = vld [vmem:[#allocation2] sm:$0xff]  ;;  %vm598_vm9 = vcmask 523264   ;;  %v1961_v31 = vmov 64.0   ;;  %v650_v33 = vld [vmem:[%s2064_s17 + $0x38] sm:$0xff]  ;;  %v649_v34 = vld [vmem:[%s2064_s17 + $0x30] sm:$0xff]  ;;  %s2447_s29 = scalar_lea.vmem %s2435_s5, %s2054_s27  ;;  %s1962_s14 = smov 1   ;;  %v710_v23 = vlaneseq }
 0x118   : > { %v596_v29 = vmul.f32 %v2117_v28, %v2117_v28  ;;  %1856 = vrcp.f32 %v1961_v31  ;;  %665 = vmatpush.msra.mxu0 %v650_v33  ;;  %v648_v36 = vld [vmem:[%s2064_s17 + $0x28] sm:$0xff]  ;;  %v647_v37 = vld [vmem:[%s2064_s17 + $0x20] sm:$0xff]  ;;  %v646_v39 = vld [vmem:[%s2064_s17 + $0x18] sm:$0xff]  ;;  %s1963_s16 = smov 127   ;;  %s1964_s24 = smov 32   ;;  %vm718_vm1 = vcmask 130048  }
 0x119   : > { %v645_v40 = vld [vmem:[%s2064_s17 + $0x10] sm:$0xff]  ;;  %v644_v41 = vld [vmem:[%s2064_s17 + $0x8] sm:$0xff]  ;;  %v643_v43 = vld [vmem:[%s2064_s17] sm:$0xff]  ;;  %s1965_s17 = smov 64   ;;  %v711_v24 = vshrl.u32 %v710_v23, 7  ;;  %v713_v25 = vand.u32 127, %v710_v23 }
 0x11a   : > { %v599_v30 = vsel %vm598_vm9, %v596_v29, 0.0  ;;  %666 = vmatpush.msra.mxu0 %v649_v34  ;;  %v1854_v55 = vld [vmem:[%s2447_s29] ss:$0 sm:$0xff]  ;;  %vm776_vm3 = vcmask 64512   ;;  %v699_v33 = vld [vmem:[%s2433_s3 + $0x8] sm:$0xff]  ;;  %s1966_s21 = smov 112  }
 0x11b   : > { %600 = vadd.xlane.f32.xlu0 %v599_v30  ;;  %v694_v63 = vld [vmem:[%s2432_s2] sm:$0xff]  ;;  %vm2171_vm2 = vcmp.le.s32.totalorder %v713_v25, %v711_v24  ;;  %v695_v34 = vld [vmem:[%s2432_s2 + $0x8] sm:$0xff]  ;;  %s1967_s13 = smov 48   ;;  %s1968_s25 = smov 96   ;;  %vm1251_vm4 = vcmask 261120   ;;  %vm1254_vm5 = vcmask 392192  }
 0x11c   : > { %667 = vmatpush.msra.mxu0 %v648_v36  ;;  %v698_v0 = vld [vmem:[%s2433_s3] sm:$0xff]  ;;  %v705_v36 = vld [vmem:[%s2434_s4 + $0x8] sm:$0xff]  ;;  %s1969_s22 = smov 16   ;;  %s1970_s28 = smov 80  }
 0x11d   : > { %v2142_v60 = vld [vmem:[#allocation2 + $0x8] sm:$0xff]  ;;  %v704_v1 = vld [vmem:[%s2434_s4] sm:$0xff]  ;;  %p1808_p5 = scmp.ne.s32.totalorder %s2048_s26, 1 }
 0x11e   : > { %v1857_v32 = vpop.eup %1856  ;;  %668 = vmatpush.msra.mxu0 %v647_v37  ;;  %v597_v61 = vmul.f32 %v2142_v60, %v2142_v60 }
 0x11f   : > { %v606_v35 = vmul.f32 64.0, %v1857_v32  ;;  %vm610_vm10 = vweird.f32 %v1857_v32 }
 0x120   : > { %669 = vmatpush.msra.mxu0 %v646_v39  ;;  %v602_v62 = vsel %vm598_vm9, %v597_v61, 0.0 }
 0x121   : > { %v607_v38 = vsub.f32 1.0, %v606_v35 }
 0x122   : > { %670 = vmatpush.msra.mxu0 %v645_v40 }
 0x123   : > { %v608_v42 = vmul.f32 %v1857_v32, %v607_v38 }
 0x124   : > { %671 = vmatpush.msra.mxu0 %v644_v41 }
 0x125   : > { %v609_v44 = vadd.f32 %v1857_v32, %v608_v42 }
 0x126   : > { %672 = vmatpush.msra.mxu0 %v643_v43 }
 0x127   : > { %v2130_v45 = vsel %vm610_vm10, %v1857_v32, %v609_v44 }
 0x18e   : > { %v601_v46 = vpop.xlane.xlu0 %600 }
 0x18f   : > { %v612_v47 = vmul.f32 %v2130_v45, %v601_v46 }
 0x191   : > { %v614_v48 = vadd.f32 1e-05, %v612_v47 }
 0x193   : > { %1858 = vrsqrt.f32 %v614_v48  ;;  %vm622_vm12 = vweird.f32 %v614_v48 }
 0x199   : > { %v1859_v49 = vpop.eup %1858 }
 0x19a   : > { %v617_v50 = vmul.f32 %v1859_v49, %v614_v48  ;;  %vm623_vm11 = vweird.f32 %v1859_v49 }
 0x19b   : > { %vm624_vm13 = vmor %vm622_vm12, %vm623_vm11 }
 0x19c   : > { %v618_v51 = vmul.f32 %v1859_v49, %v617_v50 }
 0x19e   : > { %v619_v52 = vmul.f32 0.5, %v618_v51 }
 0x1a0   : > { %v620_v53 = vsub.f32 1.5, %v619_v52 }
 0x1a2   : > { %v621_v54 = vmul.f32 %v1859_v49, %v620_v53 }
 0x1a4   : > { %v625_v56 = vsel %vm624_vm13, %v1859_v49, %v621_v54 }
 0x1a5   : > { %v636_v57 = vmul.f32 %v625_v56, %v2117_v28 }
 0x1a7   : > { %v641_v58 = vmul.f32 %v1854_v55, %v636_v57 }
 0x1a9   : > { %1772 = vmatmul.msk.f32.vlgmr.msra.gmra.mxu0 %vm598_vm9, %v641_v58 }
 0x226   : > { %v674_v59 = vpop.f32.mrf.mxu0 }
 0x227   : > { %688 = vrot.lane.b32.xlu1 %v674_v59, %s1962_s14  ;;  %682 = vrot.lane.b32.xlu0 %v674_v59, %s1963_s16  ;;  %v696_v4 = vmul.f32 %v694_v63, %v674_v59 }
 0x251   : > { %603 = vadd.xlane.f32.xlu1 %v602_v62 }
 0x299   : > { %v689_v2 = vpop.permute.xlu1 %688  ;;  %v683_v3 = vpop.permute.xlu0 %682 }
 0x29a   : > { %v700_v5 = vmul.f32 %v698_v0, %v683_v3  ;;  %v706_v6 = vmul.f32 %v704_v1, %v689_v2 }
 0x29c   : > { %v702_v7 = vadd.f32 %v700_v5, %v696_v4 }
 0x29e   : > { %v2156_v8 = vadd.f32 %v706_v6, %v702_v7 }
 0x2a0   : > { %799 = vrot.lane.b32.xlu1 %v2156_v8, %s1964_s24  ;;  %716 = vrot.lane.b32.xlu2 %v2156_v8, %s1965_s17 }
 0x2c4   : > { %v604_v9 = vpop.xlane.xlu1 %603 }
 0x2c5   : > { %v613_v10 = vmul.f32 %v2130_v45, %v604_v9 }
 0x2c7   : > { %v615_v11 = vadd.f32 1e-05, %v613_v10 }
 0x2c9   : > { %1860 = vrsqrt.f32 %v615_v11  ;;  %vm632_vm15 = vweird.f32 %v615_v11 }
 0x2cf   : > { %v1861_v12 = vpop.eup %1860 }
 0x2d0   : > { %v627_v13 = vmul.f32 %v1861_v12, %v615_v11  ;;  %vm633_vm14 = vweird.f32 %v1861_v12 }
 0x2d1   : > { %vm634_vm0 = vmor %vm632_vm15, %vm633_vm14 }
 0x2d2   : > { %v628_v14 = vmul.f32 %v1861_v12, %v627_v13 }
 0x2d4   : > { %v629_v15 = vmul.f32 0.5, %v628_v14 }
 0x2d6   : > { %v630_v16 = vsub.f32 1.5, %v629_v15 }
 0x2d8   : > { %v631_v17 = vmul.f32 %v1861_v12, %v630_v16 }
 0x2da   : > { %v635_v18 = vsel %vm634_vm0, %v1861_v12, %v631_v17 }
 0x2db   : > { %v637_v19 = vmul.f32 %v635_v18, %v2142_v60 }
 0x2dd   : > { %v642_v20 = vmul.f32 %v1854_v55, %v637_v19 }
 0x2df   : > { %1773 = vmatmul.msk.f32.gmra.mxu0 %vm598_vm9, %v642_v20 }
 0x2fa   : > { %v717_v21 = vpop.permute.xlu2 %716 }
 0x2fb   : > { %1774 = vmatpush.xpose.msk.msra.mxu1 %vm718_vm1, %v717_v21 }
 0x2fe   : > { %1775 = vmatmul.msk.f32.vlgmr.msra.gmra.mxu1 %vm718_vm1, %v2156_v8 }
 0x2ff   : > { %1780 = vmatpush.xpose.msk.msrb.mxu1 %vm718_vm1, %v717_v21 }
 0x312   : > { %v2198_v49 = vpop.permute.xlu1 %799 }
 0x35c   : > { %v677_v22 = vpop.f32.mrf.mxu0 }
 0x35d   : > { %684 = vrot.lane.b32.xlu0 %v677_v22, %s1963_s16  ;;  %v697_v37 = vmul.f32 %v695_v34, %v677_v22 }
 0x365   : > { %690 = vrot.lane.b32.xlu0 %v677_v22, %s1962_s14 }
 0x37b   : > { %v740_v26 = vpop.f32.mrf.mxu1 }
 0x37c   : > { %v770_v29 = vmul.f32 0.25, %v740_v26 }
 0x37e   : > { %v774_v30 = vsel %vm2171_vm2, %v770_v29, -inf }
 0x37f   : > { %v777_v31 = vsel %vm776_vm3, %v774_v30, -inf }
 0x380   : > { %778 = vmax.xlane.f32.xlu2 %v777_v31 }
 0x3cf   : > { %v685_v32 = vpop.permute.xlu0 %684 }
 0x3d0   : > { %v701_v35 = vmul.f32 %v699_v33, %v685_v32 }
 0x3d2   : > { %v703_v39 = vadd.f32 %v701_v35, %v697_v37 }
 0x3d7   : > { %v691_v38 = vpop.permute.xlu0 %690 }
 0x3d8   : > { %v707_v40 = vmul.f32 %v705_v36, %v691_v38 }
 0x3da   : > { %v2187_v41 = vadd.f32 %v707_v40, %v703_v39 }
 0x3dc   : > { %744 = vrot.lane.b32.xlu0 %v2187_v41, %s1965_s17 }
 0x3e4   : > { %875 = vrot.lane.b32.xlu0 %v2187_v41, %s1966_s21 }
 0x3ec   : > { %973 = vrot.lane.b32.xlu0 %v2156_v8, %s1967_s13 }
 0x3f3   : > { %v779_v42 = vpop.xlane.xlu2 %778 }
 0x3f4   : > { %v783_v43 = vsub.f32 %v774_v30, %v779_v42  ;;  %971 = vrot.lane.b32.xlu0 %v2156_v8, %s1968_s25 }
 0x3f6   : > { %v785_v44 = vmul.f32 1.442695, %v783_v43 }
 0x3f8   : > { %1862 = vpow2.f32 %v785_v44 }
 0x3fe   : > { %v1863_v46 = vpop.eup %1862 }
 0x3ff   : > { %v789_v47 = vsel %vm776_vm3, %v1863_v46, 0.0 }
 0x400   : > { %790 = vadd.xlane.f32.xlu2 %v789_v47 }
 0x418   : > { %851 = vrot.lane.b32.xlu2 %v2156_v8, %s1966_s21 }
 0x44e   : > { %v745_v48 = vpop.permute.xlu0 %744 }
 0x44f   : > { %1776 = vmatpush.xpose.msk.msra.mxu2 %vm718_vm1, %v745_v48 }
 0x452   : > { %1777 = vmatmul.msk.f32.vlgmr.msra.gmra.mxu2 %vm718_vm1, %v2187_v41 }
 0x453   : > { %820 = vmatpush.msrb.mxu2 %v2198_v49 }
 0x455   : > { %1782 = vmatpush.xpose.msk.msra.mxu2 %vm718_vm1, %v745_v48 }
 0x456   : > { %v876_v50 = vpop.permute.xlu0 %875 }
 0x45e   : > { %v2206_v55 = vpop.permute.xlu0 %973 }
 0x466   : > { %v972_v56 = vpop.permute.xlu0 %971 }
 0x473   : > { %v791_v51 = vpop.xlane.xlu2 %790 }
 0x474   : > { %1864 = vrcp.f32 %v791_v51 }
 0x47a   : > { %v1865_v52 = vpop.eup %1864 }
 0x47b   : > { %v852_v53 = vpop.permute.xlu2 %851  ;;  %v797_v54 = vmul.f32 %v1865_v52, %v1863_v46 }
 0x47c   : > { %1781 = vmatmul.msk.f32.vlgmr.msrb.gmra.mxu1 %vm718_vm1, %v852_v53 }
 0x47d   : > { %1778 = vmatmul.msk.f32.vlgmr.msrb.gmra.mxu2 %vm776_vm3, %v797_v54 }
 0x47e   : > { %1786 = vmatpush.xpose.msk.msrb.mxu2 %vm718_vm1, %v2206_v55 }
 0x485   : > { %1783 = vmatmul.msk.f32.vlgmr.msra.gmra.mxu2 %vm718_vm1, %v876_v50 }
 0x48d   : > { %1787 = vmatmul.msk.f32.vlgmr.msrb.gmra.mxu2 %vm718_vm1, %v972_v56 }
 0x4d5   : > { %v767_v57 = vpop.f32.mrf.mxu2 }
 0x4d6   : > { %v771_v58 = vmul.f32 0.25, %v767_v57 }
 0x4d8   : > { %v775_v59 = vsel %vm2171_vm2, %v771_v58, -inf }
 0x4d9   : > { %v780_v61 = vsel %vm776_vm3, %v775_v59, -inf }
 0x4da   : > { %781 = vmax.xlane.f32.xlu1 %v780_v61 }
 0x4f9   : > { %v872_v62 = vpop.f32.mrf.mxu1 }
 0x4fa   : > { %v899_v63 = vmul.f32 0.25, %v872_v62 }
 0x4fc   : > { %v901_v0 = vsel %vm2171_vm2, %v899_v63, -inf }
 0x4fd   : > { %v903_v1 = vsel %vm776_vm3, %v901_v0, -inf }
 0x4fe   : > { %904 = vmax.xlane.f32.xlu0 %v903_v1 }
 0x500   : > { %v2219_v2 = vpop.f32.mrf.mxu2 }
 0x508   : > { %v896_v3 = vpop.f32.mrf.mxu2 }
 0x509   : > { %v900_v4 = vmul.f32 0.25, %v896_v3 }
 0x50b   : > { %v902_v5 = vsel %vm2171_vm2, %v900_v4, -inf }
 0x50c   : > { %v906_v6 = vsel %vm776_vm3, %v902_v5, -inf }
 0x50d   : > { %907 = vmax.xlane.f32.xlu2 %v906_v6 }
 0x510   : > { %v996_v7 = vpop.f32.mrf.mxu2 }
 0x511   : > { %v1027_v9 = vmul.f32 0.25, %v996_v7 }
 0x513   : > { %v1029_v10 = vsel %vm2171_vm2, %v1027_v9, -inf }
 0x514   : > { %v1031_v11 = vsel %vm776_vm3, %v1029_v10, -inf }
 0x515   : > { %1032 = vmax.xlane.f32.xlu1 %v1031_v11 }
 0x52e   : > { %825 = vrot.lane.b32.xlu1 %v2187_v41, %s1964_s24 }
 0x536   : > { %1053 = vrot.lane.b32.xlu1 %v2156_v8, %s1969_s22 }
 0x53e   : > { %1105 = vrot.lane.b32.xlu1 %v2156_v8, %s1970_s28 }
 0x54d   : > { %v782_v12 = vpop.xlane.xlu1 %781 }
 0x54e   : > { %v784_v13 = vsub.f32 %v775_v59, %v782_v12 }
 0x550   : > { %v787_v14 = vmul.f32 1.442695, %v784_v13 }
 0x552   : > { %1866 = vpow2.f32 %v787_v14 }
 0x558   : > { %v1867_v15 = vpop.eup %1866 }
 0x559   : > { %v792_v16 = vsel %vm776_vm3, %v1867_v15, 0.0 }
 0x55a   : > { %793 = vadd.xlane.f32.xlu0 %v792_v16 }
 0x56e   : > { %1001 = vrot.lane.b32.xlu0 %v2187_v41, %s1967_s13 }
 0x571   : > { %v905_v17 = vpop.xlane.xlu0 %904 }
 0x572   : > { %v909_v18 = vsub.f32 %v901_v0, %v905_v17 }
 0x574   : > { %v911_v19 = vmul.f32 1.442695, %v909_v18 }
 0x576   : > { %1868 = vpow2.f32 %v911_v19 }
 0x57c   : > { %v1869_v20 = vpop.eup %1868 }
 0x57d   : > { %v915_v21 = vsel %vm776_vm3, %v1869_v20, 0.0 }
 0x57e   : > { %916 = vadd.xlane.f32.xlu2 %v915_v21 }
 0x580   : > { %v908_v8 = vpop.xlane.xlu2 %907 }
 0x581   : > { %v910_v22 = vsub.f32 %v902_v5, %v908_v8 }
 0x583   : > { %v913_v25 = vmul.f32 1.442695, %v910_v22 }
 0x588   : > { %v1033_v23 = vpop.xlane.xlu1 %1032 }
 0x589   : > { %v1037_v24 = vsub.f32 %v1029_v10, %v1033_v23 }
 0x58b   : > { %v1039_v26 = vmul.f32 1.442695, %v1037_v24 }
 0x58d   : > { %1870 = vpow2.f32 %v1039_v26 }
 0x58e   : > { %1872 = vpow2.f32 %v913_v25 }
 0x593   : > { %v1871_v29 = vpop.eup %1870 }
 0x594   : > { %v1873_v30 = vpop.eup %1872  ;;  %v1043_v31 = vsel %vm776_vm3, %v1871_v29, 0.0 }
 0x595   : > { %1044 = vadd.xlane.f32.xlu2 %v1043_v31  ;;  %v918_v32 = vsel %vm776_vm3, %v1873_v30, 0.0 }
 0x598   : > { %919 = vadd.xlane.f32.xlu0 %v918_v32  ;;  %v1264_v32 = vld [vmem:[%s2069_s20 + $0x38] sm:$0xff] }
 0x599   : > { %1279 = vmatpush.msrb.mxu0 %v1264_v32 }
 0x5a0   : > { %v826_v33 = vpop.permute.xlu1 %825 }
 0x5a1   : > { %846 = vmatpush.msra.mxu3 %v826_v33  ;;  %966 = vmatpush.msra.mxu1 %v826_v33  ;;  %v1263_v33 = vld [vmem:[%s2069_s20 + $0x30] sm:$0xff] }
 0x5a2   : > { %1280 = vmatpush.msrb.mxu0 %v1263_v33 }
 0x5a3   : > { %943 = vmatpush.msrb.mxu3 %v2198_v49 }
 0x5a8   : > { %v1054_v34 = vpop.permute.xlu1 %1053 }
 0x5a9   : > { %1074 = vmatpush.msrb.mxu1 %v1054_v34 }
 0x5ac   : > { %1129 = vrot.lane.b32.xlu0 %v2187_v41, %s1970_s28 }
 0x5ad   : > { %999 = vrot.lane.b32.xlu2 %v2187_v41, %s1968_s25 }
 0x5b0   : > { %v1106_v52 = vpop.permute.xlu1 %1105 }
 0x5cd   : > { %v794_v35 = vpop.xlane.xlu0 %793 }
 0x5ce   : > { %1874 = vrcp.f32 %v794_v35  ;;  %v1261_v35 = vld [vmem:[%s2069_s20 + $0x20] sm:$0xff] }
 0x5d4   : > { %v1875_v36 = vpop.eup %1874 }
 0x5d5   : > { %v798_v37 = vmul.f32 %v1875_v36, %v1867_v15  ;;  %v1260_v36 = vld [vmem:[%s2069_s20 + $0x18] sm:$0xff] }
 0x5d7   : > { %1779 = vmatmul.msk.f32.vlgmr.msra.gmra.mxu3 %vm776_vm3, %v798_v37  ;;  %v1259_v37 = vld [vmem:[%s2069_s20 + $0x10] sm:$0xff] }
 0x5e0   : > { %v1002_v38 = vpop.permute.xlu0 %1001 }
 0x5e1   : > { %1788 = vmatpush.xpose.msk.msra.mxu3 %vm718_vm1, %v1002_v38 }
 0x5f1   : > { %v917_v39 = vpop.xlane.xlu2 %916 }
 0x5f2   : > { %1876 = vrcp.f32 %v917_v39  ;;  %v1257_v39 = vld [vmem:[%s2069_s20] sm:$0xff] }
 0x5f8   : > { %v1877_v40 = vpop.eup %1876 }
 0x5f9   : > { %v923_v42 = vmul.f32 %v1877_v40, %v1869_v20 }
 0x5fb   : > { %1784 = vmatmul.msk.f32.vlgmr.msrb.gmra.mxu3 %vm776_vm3, %v923_v42 }
 0x5fc   : > { %1794 = vmatpush.xpose.msk.msrb.mxu3 %vm718_vm1, %v1002_v38  ;;  %v1258_v38 = vld [vmem:[%s2069_s20 + $0x8] sm:$0xff] }
 0x608   : > { %v1045_v43 = vpop.xlane.xlu2 %1044 }
 0x60b   : > { %v920_v44 = vpop.xlane.xlu0 %919 }
 0x60c   : > { %1878 = vrcp.f32 %v920_v44 }
 0x60d   : > { %1880 = vrcp.f32 %v1045_v43 }
 0x610   : > { %v1000_v46 = vpop.permute.xlu2 %999 }
 0x611   : > { %1789 = vmatmul.msk.f32.vlgmr.msra.gmra.mxu3 %vm718_vm1, %v1000_v46 }
 0x612   : > { %v1879_v47 = vpop.eup %1878 }
 0x613   : > { %v924_v48 = vmul.f32 %v1879_v47, %v1873_v30  ;;  %v1881_v49 = vpop.eup %1880 }
 0x614   : > { %v1051_v50 = vmul.f32 %v1881_v49, %v1871_v29 }
 0x615   : > { %1785 = vmatmul.msk.f32.vlgmr.msra.gmra.mxu1 %vm776_vm3, %v924_v48 }
 0x616   : > { %1792 = vmatpush.xpose.msk.msra.mxu1 %vm718_vm1, %v2206_v55 }
 0x61d   : > { %1790 = vmatmul.msk.f32.vlgmr.msrb.gmra.mxu1 %vm776_vm3, %v1051_v50 }
 0x61e   : > { %1197 = vmatpush.msrb.mxu1 %v1054_v34  ;;  %v1130_v51 = vpop.permute.xlu0 %1129  ;;  %v1262_v34 = vld [vmem:[%s2069_s20 + $0x28] sm:$0xff] }
 0x61f   : > { %1795 = vmatmul.msk.f32.vlgmr.msrb.gmra.mxu3 %vm718_vm1, %v1130_v51  ;;  %1281 = vmatpush.msrb.mxu0 %v1262_v34 }
 0x621   : > { %1282 = vmatpush.msrb.mxu0 %v1261_v35 }
 0x623   : > { %1283 = vmatpush.msrb.mxu0 %v1260_v36 }
 0x625   : > { %1793 = vmatmul.msk.f32.vlgmr.msra.gmra.mxu1 %vm718_vm1, %v1106_v52  ;;  %1284 = vmatpush.msrb.mxu0 %v1259_v37  ;;  %v1855_v37 = vld [vmem:[%s504_s23] ss:$0 sm:$0xff] }
 0x627   : > { %1285 = vmatpush.msrb.mxu0 %v1258_v38 }
 0x629   : > { %1286 = vmatpush.msrb.mxu0 %v1257_v39 }
 0x65a   : > { %v2255_v53 = vpop.f32.mrf.mxu3 }
 0x67e   : > { %v945_v54 = vpop.f32.mrf.mxu3 }
 0x692   : > { %v968_v56 = vpop.f32.mrf.mxu1 }
 0x694   : > { %v1024_v57 = vpop.f32.mrf.mxu3 }
 0x695   : > { %v1028_v58 = vmul.f32 0.25, %v1024_v57 }
 0x697   : > { %v1030_v55 = vsel %vm2171_vm2, %v1028_v58, -inf }
 0x698   : > { %v1034_v59 = vsel %vm776_vm3, %v1030_v55, -inf }
 0x699   : > { %1035 = vmax.xlane.f32.xlu0 %v1034_v59 }
 0x69a   : > { %v1076_v61 = vpop.f32.mrf.mxu1 }
 0x6a2   : > { %v1126_v62 = vpop.f32.mrf.mxu1  ;;  %v1150_v63 = vpop.f32.mrf.mxu3 }
 0x6a3   : > { %v1153_v0 = vmul.f32 0.25, %v1126_v62  ;;  %v1154_v1 = vmul.f32 0.25, %v1150_v63 }
 0x6a5   : > { %v1155_v3 = vsel %vm2171_vm2, %v1153_v0, -inf  ;;  %v1156_v4 = vsel %vm2171_vm2, %v1154_v1, -inf  ;;  %v1357_v0 = vld [vmem:[%s2079_s30 + $0xa8] sm:$0xff]  ;;  %v1358_v1 = vld [vmem:[%s2079_s30 + $0xb0] sm:$0xff] }
 0x6a6   : > { %v1157_v5 = vsel %vm776_vm3, %v1155_v3, -inf  ;;  %v1160_v6 = vsel %vm776_vm3, %v1156_v4, -inf  ;;  %1374 = vmatpush.msra.mxu3 %v1357_v0  ;;  %1397 = vmatpush.msra.mxu1 %v1358_v1  ;;  %v1489_v1 = vld [vmem:[%s2084_s15 + $0x40] sm:$0xff] }
 0x6a7   : > { %1158 = vmax.xlane.f32.xlu2 %v1157_v5  ;;  %1161 = vmax.xlane.f32.xlu1 %v1160_v6  ;;  %v1356_v5 = vld [vmem:[%s2079_s30 + $0xa0] sm:$0xff]  ;;  %v1351_v6 = vld [vmem:[%s2079_s30 + $0x78] sm:$0xff] }
 0x70c   : > { %v1036_v7 = vpop.xlane.xlu0 %1035 }
 0x70d   : > { %v1038_v9 = vsub.f32 %v1030_v55, %v1036_v7  ;;  %v1352_v7 = vld [vmem:[%s2079_s30 + $0x80] sm:$0xff] }
 0x70f   : > { %v1041_v10 = vmul.f32 1.442695, %v1038_v9  ;;  %v1353_v9 = vld [vmem:[%s2079_s30 + $0x88] sm:$0xff] }
 0x711   : > { %1882 = vpow2.f32 %v1041_v10  ;;  %v1348_v10 = vld [vmem:[%s2079_s30 + $0x60] sm:$0xff] }
 0x717   : > { %v1883_v11 = vpop.eup %1882 }
 0x718   : > { %v1046_v12 = vsel %vm776_vm3, %v1883_v11, 0.0 }
 0x719   : > { %1047 = vadd.xlane.f32.xlu2 %v1046_v12  ;;  %v1350_v12 = vld [vmem:[%s2079_s30 + $0x70] sm:$0xff] }
 0x71a   : > { %v1162_v13 = vpop.xlane.xlu1 %1161  ;;  %v1159_v14 = vpop.xlane.xlu2 %1158 }
 0x71b   : > { %v1164_v15 = vsub.f32 %v1156_v4, %v1162_v13  ;;  %v1163_v16 = vsub.f32 %v1155_v3, %v1159_v14  ;;  %v1359_v3 = vld [vmem:[%s2079_s30 + $0xb8] sm:$0xff]  ;;  %v1345_v13 = vld [vmem:[%s2079_s30 + $0x48] sm:$0xff]  ;;  %v1346_v14 = vld [vmem:[%s2079_s30 + $0x50] sm:$0xff] }
 0x71c   : > { %v1355_v4 = vld [vmem:[%s2079_s30 + $0x98] sm:$0xff] }
 0x71d   : > { %v1167_v27 = vmul.f32 1.442695, %v1164_v15  ;;  %v1165_v17 = vmul.f32 1.442695, %v1163_v16  ;;  %1398 = vmatpush.msra.mxu1 %v1355_v4  ;;  %v1347_v15 = vld [vmem:[%s2079_s30 + $0x58] sm:$0xff]  ;;  %v1342_v16 = vld [vmem:[%s2079_s30 + $0x30] sm:$0xff] }
 0x71f   : > { %1884 = vpow2.f32 %v1167_v27  ;;  %1399 = vmatpush.msra.mxu1 %v1352_v7  ;;  %v1343_v27 = vld [vmem:[%s2079_s30 + $0x38] sm:$0xff]  ;;  %v1485_v7 = vld [vmem:[%s2084_s15 + $0x20] sm:$0xff] }
 0x720   : > { %1886 = vpow2.f32 %v1165_v17  ;;  %v1344_v17 = vld [vmem:[%s2079_s30 + $0x40] sm:$0xff] }
 0x725   : > { %v1885_v18 = vpop.eup %1884 }
 0x726   : > { %v1887_v19 = vpop.eup %1886  ;;  %v1172_v20 = vsel %vm776_vm3, %v1885_v18, 0.0 }
 0x727   : > { %1173 = vadd.xlane.f32.xlu1 %v1172_v20  ;;  %v1169_v21 = vsel %vm776_vm3, %v1887_v19, 0.0  ;;  %v1341_v20 = vld [vmem:[%s2079_s30 + $0x28] sm:$0xff] }
 0x728   : > { %1170 = vadd.xlane.f32.xlu0 %v1169_v21  ;;  %v1336_v21 = vld [vmem:[%s2079_s30] sm:$0xff] }
 0x731   : > { %1079 = vrot.lane.b32.xlu2 %v2187_v41, %s1969_s22 }
 0x739   : > { %1229 = vrot.lane.b32.xlu2 %v968_v56, %s1969_s22 }
 0x73c   : > { %1227 = vrot.lane.b32.xlu0 %v945_v54, %s1969_s22 }
 0x740   : > { %1235 = vrot.lane.b32.xlu1 %v1076_v61, %s1964_s24 }
 0x78c   : > { %v1048_v8 = vpop.xlane.xlu2 %1047 }
 0x78d   : > { %1888 = vrcp.f32 %v1048_v8  ;;  %v1337_v8 = vld [vmem:[%s2079_s30 + $0x8] sm:$0xff] }
 0x793   : > { %v1889_v22 = vpop.eup %1888 }
 0x794   : > { %v1052_v23 = vmul.f32 %v1889_v22, %v1883_v11  ;;  %v1080_v24 = vpop.permute.xlu2 %1079  ;;  %v1349_v11 = vld [vmem:[%s2079_s30 + $0x68] sm:$0xff]  ;;  %v1338_v22 = vld [vmem:[%s2079_s30 + $0x10] sm:$0xff] }
 0x795   : > { %1100 = vmatpush.msra.mxu2 %v1080_v24  ;;  %1400 = vmatpush.msra.mxu1 %v1349_v11  ;;  %v1499_v11 = vld [vmem:[%s2084_s15 + $0x90] sm:$0xff] }
 0x796   : > { %1791 = vmatmul.msk.f32.vlgmr.msra.gmra.mxu2 %vm776_vm3, %v1052_v23 }
 0x797   : > { %1220 = vmatpush.msrb.mxu2 %v1080_v24  ;;  %1401 = vmatpush.msra.mxu1 %v1346_v14 }
 0x799   : > { %1420 = vmatpush.msra.mxu2 %v1359_v3  ;;  %1402 = vmatpush.msra.mxu1 %v1343_v27  ;;  %v1488_v3 = vld [vmem:[%s2084_s15 + $0x38] sm:$0xff] }
 0x79a   : > { %v1174_v41 = vpop.xlane.xlu1 %1173 }
 0x79b   : > { %1890 = vrcp.f32 %v1174_v41  ;;  %v1171_v25 = vpop.xlane.xlu0 %1170  ;;  %1421 = vmatpush.msra.mxu2 %v1356_v5  ;;  %v1486_v5 = vld [vmem:[%s2084_s15 + $0x28] sm:$0xff] }
 0x79c   : > { %1892 = vrcp.f32 %v1171_v25  ;;  %v1230_v51 = vpop.permute.xlu2 %1229 }
 0x79d   : > { %v1250_v52 = vsel %vm718_vm1, %v2255_v53, %v1230_v51  ;;  %1422 = vmatpush.msra.mxu2 %v1353_v9  ;;  %v1500_v9 = vld [vmem:[%s2084_s15 + $0x98] sm:$0xff] }
 0x79f   : > { %1423 = vmatpush.msra.mxu2 %v1350_v12  ;;  %v1483_v12 = vld [vmem:[%s2084_s15 + $0x10] sm:$0xff] }
 0x7a1   : > { %v1891_v26 = vpop.eup %1890  ;;  %1424 = vmatpush.msra.mxu2 %v1347_v15 }
 0x7a2   : > { %v1893_v29 = vpop.eup %1892  ;;  %v1178_v30 = vmul.f32 %v1891_v26, %v1885_v18  ;;  %v1339_v18 = vld [vmem:[%s2079_s30 + $0x18] sm:$0xff] }
 0x7a3   : > { %v1177_v31 = vmul.f32 %v1893_v29, %v1887_v19  ;;  %1425 = vmatpush.msra.mxu2 %v1344_v17  ;;  %v1340_v19 = vld [vmem:[%s2079_s30 + $0x20] sm:$0xff] }
 0x7a4   : > { %1797 = vmatmul.msk.f32.vlgmr.msrb.gmra.mxu2 %vm776_vm3, %v1178_v30  ;;  %1403 = vmatpush.msra.mxu1 %v1340_v19  ;;  %v1497_v17 = vld [vmem:[%s2084_s15 + $0x80] sm:$0xff] }
 0x7a5   : > { %1796 = vmatmul.msk.f32.vlgmr.msrb.gmra.mxu1 %vm776_vm3, %v1177_v31  ;;  %1426 = vmatpush.msra.mxu2 %v1341_v20 }
 0x7a6   : > { %1404 = vmatpush.msra.mxu1 %v1337_v8 }
 0x7a7   : > { %1427 = vmatpush.msra.mxu2 %v1338_v22 }
 0x7ae   : > { %v1228_v44 = vpop.permute.xlu0 %1227 }
 0x7af   : > { %v1249_v47 = vsel %vm718_vm1, %v2219_v2, %v1228_v44 }
 0x7b2   : > { %v1236_v46 = vpop.permute.xlu1 %1235 }
 0x7b3   : > { %v1252_v48 = vsel %vm1251_vm4, %v1249_v47, %v1236_v46 }
 0x819   : > { %v1102_v40 = vpop.f32.mrf.mxu2 }
 0x822   : > { %v1199_v42 = vpop.f32.mrf.mxu1 }
 0x823   : > { %1243 = vrot.lane.b32.xlu0 %v1199_v42, %s1967_s13 }
 0x827   : > { %v1222_v43 = vpop.f32.mrf.mxu2 }
 0x828   : > { %1245 = vrot.lane.b32.xlu1 %v1222_v43, %s1967_s13 }
 0x82b   : > { %1237 = vrot.lane.b32.xlu0 %v1102_v40, %s1964_s24 }
 0x895   : > { %v1244_v49 = vpop.permute.xlu0 %1243 }
 0x896   : > { %v1255_v50 = vsel %vm1254_vm5, %v1252_v48, %v1244_v49 }
 0x897   : > { %1798 = vmatmul.msk.f32.vlgmr.msrb.gmra.mxu0 %vm598_vm9, %v1255_v50 }
 0x89a   : > { %v1246_v56 = vpop.permute.xlu1 %1245 }
 0x89d   : > { %v1238_v54 = vpop.permute.xlu0 %1237 }
 0x89e   : > { %v1253_v57 = vsel %vm1251_vm4, %v1250_v52, %v1238_v54  ;;  %v1496_v52 = vld [vmem:[%s2084_s15 + $0x78] sm:$0xff]  ;;  %v1495_v54 = vld [vmem:[%s2084_s15 + $0x70] sm:$0xff] }
 0x89f   : > { %v1256_v58 = vsel %vm1254_vm5, %v1253_v57, %v1246_v56  ;;  %1511 = vmatpush.msra.mxu0 %v1496_v52  ;;  %v1494_v57 = vld [vmem:[%s2084_s15 + $0x68] sm:$0xff] }
 0x8a0   : > { %1799 = vmatmul.msk.f32.gmra.mxu0 %vm598_vm9, %v1256_v58  ;;  %v1504_v58 = vld [vmem:[%s2084_s15 + $0xb8] sm:$0xff] }
 0x8a1   : > { %1512 = vmatpush.msra.mxu0 %v1495_v54 }
 0x8a3   : > { %1513 = vmatpush.msra.mxu0 %v1494_v57 }
 0x914   : > { %v1288_v55 = vpop.f32.mrf.mxu0 }
 0x915   : > { %v2295_v2 = vadd.f32 %v1288_v55, %v2117_v28  ;;  %v1503_v55 = vld [vmem:[%s2084_s15 + $0xb0] sm:$0xff] }
 0x917   : > { %v1297_v59 = vmul.f32 %v2295_v2, %v2295_v2 }
 0x919   : > { %v1299_v53 = vsel %vm598_vm9, %v1297_v59, 0.0  ;;  %v1493_v59 = vld [vmem:[%s2084_s15 + $0x60] sm:$0xff] }
 0x91a   : > { %1300 = vadd.xlane.f32.xlu2 %v1299_v53  ;;  %v1502_v53 = vld [vmem:[%s2084_s15 + $0xa8] sm:$0xff]  ;;  %1514 = vmatpush.msra.mxu0 %v1493_v59 }
 0x91d   : > { %v1291_v61 = vpop.f32.mrf.mxu0 }
 0x91e   : > { %v2301_v62 = vadd.f32 %v1291_v61, %v2142_v60  ;;  %v1354_v60 = vld [vmem:[%s2079_s30 + $0x90] sm:$0xff]  ;;  %v1492_v61 = vld [vmem:[%s2084_s15 + $0x58] sm:$0xff] }
 0x91f   : > { %1375 = vmatpush.msra.mxu3 %v1354_v60  ;;  %1515 = vmatpush.msra.mxu0 %v1492_v61  ;;  %v1487_v60 = vld [vmem:[%s2084_s15 + $0x30] sm:$0xff] }
 0x920   : > { %v1298_v63 = vmul.f32 %v2301_v62, %v2301_v62 }
 0x921   : > { %1376 = vmatpush.msra.mxu3 %v1351_v6  ;;  %v1501_v6 = vld [vmem:[%s2084_s15 + $0xa0] sm:$0xff] }
 0x922   : > { %v1302_v28 = vsel %vm598_vm9, %v1298_v63, 0.0  ;;  %v1491_v63 = vld [vmem:[%s2084_s15 + $0x50] sm:$0xff] }
 0x923   : > { %1303 = vadd.xlane.f32.xlu0 %v1302_v28  ;;  %1377 = vmatpush.msra.mxu3 %v1348_v10  ;;  %v1490_v28 = vld [vmem:[%s2084_s15 + $0x48] sm:$0xff]  ;;  %v1484_v10 = vld [vmem:[%s2084_s15 + $0x18] sm:$0xff] }
 0x924   : > { %1516 = vmatpush.msra.mxu0 %v1491_v63 }
 0x925   : > { %1378 = vmatpush.msra.mxu3 %v1345_v13  ;;  %v1498_v13 = vld [vmem:[%s2084_s15 + $0x88] sm:$0xff] }
 0x926   : > { %1517 = vmatpush.msra.mxu0 %v1490_v28 }
 0x927   : > { %1379 = vmatpush.msra.mxu3 %v1342_v16  ;;  %v1482_v16 = vld [vmem:[%s2084_s15 + $0x8] sm:$0xff] }
 0x928   : > { %1518 = vmatpush.msra.mxu0 %v1489_v1 }
 0x929   : > { %1380 = vmatpush.msra.mxu3 %v1339_v18  ;;  %v1481_v18 = vld [vmem:[%s2084_s15] sm:$0xff] }
 0x92a   : > { %1519 = vmatpush.msra.mxu0 %v1488_v3 }
 0x92b   : > { %1381 = vmatpush.msra.mxu3 %v1336_v21 }
 0x92c   : > { %1520 = vmatpush.msra.mxu0 %v1487_v60 }
 0x92d   : > { %1542 = vmatpush.msrb.mxu3 %v1504_v58 }
 0x92e   : > { %1521 = vmatpush.msra.mxu0 %v1486_v5 }
 0x92f   : > { %1543 = vmatpush.msrb.mxu3 %v1503_v55 }
 0x930   : > { %1522 = vmatpush.msra.mxu0 %v1485_v7 }
 0x931   : > { %1544 = vmatpush.msrb.mxu3 %v1502_v53 }
 0x932   : > { %1523 = vmatpush.msra.mxu0 %v1484_v10 }
 0x933   : > { %1545 = vmatpush.msrb.mxu3 %v1501_v6 }
 0x934   : > { %1524 = vmatpush.msra.mxu0 %v1483_v12 }
 0x935   : > { %1546 = vmatpush.msrb.mxu3 %v1500_v9 }
 0x936   : > { %1525 = vmatpush.msra.mxu0 %v1482_v16 }
 0x937   : > { %1547 = vmatpush.msrb.mxu3 %v1499_v11 }
 0x938   : > { %1526 = vmatpush.msra.mxu0 %v1481_v18 }
 0x939   : > { %1548 = vmatpush.msrb.mxu3 %v1498_v13 }
 0x93b   : > { %1549 = vmatpush.msrb.mxu3 %v1497_v17 }
 0x98d   : > { %v1301_v23 = vpop.xlane.xlu2 %1300 }
 0x98e   : > { %v1305_v24 = vmul.f32 %v1301_v23, %v2130_v45 }
 0x990   : > { %v1307_v41 = vadd.f32 1e-05, %v1305_v24 }
 0x992   : > { %1894 = vrsqrt.f32 %v1307_v41  ;;  %vm1315_vm7 = vweird.f32 %v1307_v41 }
 0x996   : > { %v1304_v25 = vpop.xlane.xlu0 %1303 }
 0x997   : > { %v1306_v26 = vmul.f32 %v1304_v25, %v2130_v45 }
 0x998   : > { %v1895_v29 = vpop.eup %1894 }
 0x999   : > { %v1310_v30 = vmul.f32 %v1895_v29, %v1307_v41  ;;  %v1308_v31 = vadd.f32 1e-05, %v1306_v26  ;;  %vm1316_vm6 = vweird.f32 %v1895_v29 }
 0x99a   : > { %vm1317_vm8 = vmor %vm1315_vm7, %vm1316_vm6 }
 0x99b   : > { %v1311_v32 = vmul.f32 %v1895_v29, %v1310_v30  ;;  %1896 = vrsqrt.f32 %v1308_v31  ;;  %vm1325_vm11 = vweird.f32 %v1308_v31 }
 0x99d   : > { %v1312_v33 = vmul.f32 0.5, %v1311_v32 }
 0x99f   : > { %v1313_v34 = vsub.f32 1.5, %v1312_v33 }
 0x9a1   : > { %v1897_v35 = vpop.eup %1896  ;;  %v1314_v36 = vmul.f32 %v1895_v29, %v1313_v34 }
 0x9a2   : > { %v1320_v38 = vmul.f32 %v1897_v35, %v1308_v31  ;;  %vm1326_vm10 = vweird.f32 %v1897_v35 }
 0x9a3   : > { %v1318_v39 = vsel %vm1317_vm8, %v1895_v29, %v1314_v36  ;;  %vm1327_vm12 = vmor %vm1325_vm11, %vm1326_vm10 }
 0x9a4   : > { %v1329_v40 = vmul.f32 %v1318_v39, %v2295_v2  ;;  %v1321_v42 = vmul.f32 %v1897_v35, %v1320_v38 }
 0x9a6   : > { %v1334_v43 = vmul.f32 %v1855_v37, %v1329_v40  ;;  %v1322_v44 = vmul.f32 0.5, %v1321_v42 }
 0x9a8   : > { %v1323_v46 = vsub.f32 1.5, %v1322_v44  ;;  %1800 = vmatmul.msk.f32.vlgmr.msra.gmra.mxu3 %vm598_vm9, %v1334_v43  ;;  %1802 = vmatmul.msk.f32.vlgmr.msra.gmra.mxu1 %vm598_vm9, %v1334_v43 }
 0x9a9   : > { %1804 = vmatmul.msk.f32.vlgmr.msra.gmra.mxu2 %vm598_vm9, %v1334_v43 }
 0x9aa   : > { %v1324_v47 = vmul.f32 %v1897_v35, %v1323_v46 }
 0x9ac   : > { %v1328_v48 = vsel %vm1327_vm12, %v1897_v35, %v1324_v47 }
 0x9ad   : > { %v1330_v49 = vmul.f32 %v1328_v48, %v2301_v62 }
 0x9af   : > { %v1335_v50 = vmul.f32 %v1855_v37, %v1330_v49 }
 0x9b1   : > { %1801 = vmatmul.msk.f32.gmra.mxu3 %vm598_vm9, %v1335_v50  ;;  %1803 = vmatmul.msk.f32.gmra.mxu1 %vm598_vm9, %v1335_v50 }
 0x9b2   : > { %1805 = vmatmul.msk.f32.gmra.mxu2 %vm598_vm9, %v1335_v50 }
 0xa25   : > { %v2345_v51 = vpop.f32.mrf.mxu1 }
 0xa26   : > { %1463 = vrot.lane.b32.xlu1 %v2345_v51, %s1965_s17  ;;  %v1436_v15 = vsub.f32 0.0, %v2345_v51 }
 0xa28   : > { %v1441_v19 = vmul.f32 1.442695, %v1436_v15 }
 0xa2a   : > { %1898 = vpow2.f32 %v1441_v19 }
 0xa2b   : > { %v1383_v14 = vpop.f32.mrf.mxu3 }
 0xa2c   : > { %v1429_v56 = vpop.f32.mrf.mxu2  ;;  %v1435_v27 = vsub.f32 0.0, %v1383_v14 }
 0xa2e   : > { %1465 = vrot.lane.b32.xlu1 %v1429_v56, %s1965_s17  ;;  %v1409_v4 = vpop.f32.mrf.mxu1  ;;  %v1439_v20 = vmul.f32 1.442695, %v1435_v27 }
 0xa2f   : > { %v1438_v21 = vsub.f32 0.0, %v1409_v4 }
 0xa30   : > { %1900 = vpow2.f32 %v1439_v20  ;;  %v1899_v22 = vpop.eup %1898 }
 0xa31   : > { %v1445_v8 = vmul.f32 1.442695, %v1438_v21  ;;  %v1448_v41 = vadd.f32 1.0, %v1899_v22 }
 0xa33   : > { %1902 = vpow2.f32 %v1445_v8 }
 0xa34   : > { %v1386_v23 = vpop.f32.mrf.mxu3  ;;  %1904 = vrcp.f32 %v1448_v41 }
 0xa35   : > { %v1432_v0 = vpop.f32.mrf.mxu2  ;;  %v1437_v25 = vsub.f32 0.0, %v1386_v23 }
 0xa36   : > { %1469 = vrot.lane.b32.xlu1 %v1432_v0, %s1965_s17  ;;  %v1901_v24 = vpop.eup %1900 }
 0xa37   : > { %v1447_v26 = vadd.f32 1.0, %v1901_v24  ;;  %v1443_v29 = vmul.f32 1.442695, %v1437_v25 }
 0xa39   : > { %v1903_v30 = vpop.eup %1902  ;;  %1906 = vrcp.f32 %v1447_v26 }
 0xa3a   : > { %v1450_v32 = vadd.f32 1.0, %v1903_v30  ;;  %1908 = vpow2.f32 %v1443_v29  ;;  %v1905_v33 = vpop.eup %1904 }
 0xa3b   : > { %v1456_v35 = vmul.f32 %v1905_v33, %v2345_v51 }
 0xa3c   : > { %1910 = vrcp.f32 %v1450_v32 }
 0xa3e   : > { %1467 = vrot.lane.b32.xlu1 %v1409_v4, %s1965_s17 }
 0xa3f   : > { %v1907_v34 = vpop.eup %1906 }
 0xa40   : > { %v1909_v36 = vpop.eup %1908  ;;  %v1455_v37 = vmul.f32 %v1907_v34, %v1383_v14 }
 0xa41   : > { %v1449_v43 = vadd.f32 1.0, %v1909_v36 }
 0xa42   : > { %v1911_v44 = vpop.eup %1910 }
 0xa43   : > { %v1458_v46 = vmul.f32 %v1911_v44, %v1409_v4  ;;  %1912 = vrcp.f32 %v1449_v43 }
 0xa49   : > { %v1913_v49 = vpop.eup %1912 }
 0xa4a   : > { %v1457_v50 = vmul.f32 %v1913_v49, %v1386_v23 }
 0xa98   : > { %v1464_v31 = vpop.permute.xlu1 %1463 }
 0xaa0   : > { %v1466_v38 = vpop.permute.xlu1 %1465 }
 0xaa1   : > { %v1471_v39 = vsel %vm598_vm9, %v1464_v31, %v1466_v38  ;;  %v1478_v40 = vmul.f32 %v1466_v38, %v1456_v35 }
 0xaa2   : > { %v1477_v42 = vmul.f32 %v1471_v39, %v1455_v37 }
 0xaa3   : > { %1806 = vmatmul.msk.f32.vlgmr.msrb.gmra.mxu3 %vm598_vm9, %v1478_v40 }
 0xaa4   : > { %1527 = vmatmul.f32.vlgmr.msra.gmra.mxu0 %v1477_v42 }
 0xaa8   : > { %v1470_v47 = vpop.permute.xlu1 %1469 }
 0xaa9   : > { %v1480_v48 = vmul.f32 %v1470_v47, %v1458_v46 }
 0xaab   : > { %1807 = vmatmul.msk.f32.gmra.mxu3 %vm598_vm9, %v1480_v48 }
 0xab0   : > { %v1468_v51 = vpop.permute.xlu1 %1467 }
 0xab1   : > { %v1472_v52 = vsel %vm598_vm9, %v1468_v51, %v1470_v47 }
 0xab2   : > { %v1479_v54 = vmul.f32 %v1472_v52, %v1457_v50 }
 0xab4   : > { %1530 = vmatmul.f32.gmra.mxu0 %v1479_v54 }
 0xb21   : > { %v1528_v56 = vpop.f32.mrf.mxu0 }
 0xb26   : > { %v1551_v57 = vpop.f32.mrf.mxu3 }
 0xb27   : > { %v1552_v58 = vadd.f32 %v1551_v57, %v1528_v56 }
 0xb29   : > { %v2383_v55 = vadd.f32 %v1552_v58, %v2295_v2 }
 0xb2b   : > { %1559 = vst.msk [vmem:[#allocation2] sm:$0xff] %vm598_vm9, %v2383_v55 }
 0xb2e   : > { %v1554_v59 = vpop.f32.mrf.mxu3 }
 0xb31   : > { %v1531_v53 = vpop.f32.mrf.mxu0 }
 0xb32   : > { %v1555_v61 = vadd.f32 %v1554_v59, %v1531_v53  ;;  %1564 = sbr.rel (%p1808_p5) target bundleno = 3156 (0xc54), region = 80 }
 0xb34   : > { %v1558_v63 = vadd.f32 %v1555_v61, %v2301_v62 }
 0xb36   : > { %1560 = vst.msk [vmem:[#allocation2 + $0x8] sm:$0xff] %vm598_vm9, %v1558_v63 }
 0xb37   : > { %v1567_v28 = vmul.f32 %v1558_v63, %v1558_v63  ;;  %vm1577_vm13 = vcmask 516096   ;;  %v1566_v2 = vmul.f32 %v2383_v55, %v2383_v55  ;;  %vm1573_vm14 = vcmask 523271   ;;  %v1624_v62 = vld [vmem:[%s2442_s12 + $0x38] sm:$0xff]  ;;  %v1623_v60 = vld [vmem:[%s2442_s12 + $0x30] sm:$0xff]  ;;  %v1622_v4 = vld [vmem:[%s2442_s12 + $0x28] sm:$0xff] }
 0xb38   : > { %1641 = vmatpush.msra.mxu0 %v1624_v62  ;;  %v1621_v5 = vld [vmem:[%s2442_s12 + $0x20] sm:$0xff]  ;;  %v1620_v6 = vld [vmem:[%s2442_s12 + $0x18] sm:$0xff]  ;;  %v1619_v7 = vld [vmem:[%s2442_s12 + $0x10] sm:$0xff]  ;;  %vm1629_vm5 = vcmask 1041409   ;;  %vm1653_vm6 = vcmask 517120  }
 0xb39   : > { %v1570_v0 = vrot.slane %v1567_v28, 7  ;;  %v1574_v3 = vsel %vm1573_vm14, %v1566_v2, 0.0  ;;  %v1618_v10 = vld [vmem:[%s2442_s12 + $0x8] sm:$0xff]  ;;  %v1617_v12 = vld [vmem:[%s2442_s12] sm:$0xff] }
 0xb3a   : > { %1642 = vmatpush.msra.mxu0 %v1623_v60  ;;  %v1914_v29 = vld [vmem:[%s2441_s11] ss:$0 sm:$0xff] }
 0xb3b   : > { %v1578_v1 = vsel %vm1577_vm13, %v1570_v0, 0.0 }
 0xb3c   : > { %1579 = vadd.xlane.f32.xlu0 %v1578_v1  ;;  %1643 = vmatpush.msra.mxu0 %v1622_v4 }
 0xb3e   : > { %1644 = vmatpush.msra.mxu0 %v1621_v5 }
 0xb40   : > { %1645 = vmatpush.msra.mxu0 %v1620_v6 }
 0xb42   : > { %1646 = vmatpush.msra.mxu0 %v1619_v7 }
 0xb44   : > { %1575 = vadd.xlane.f32.xlu0 %v1574_v3  ;;  %1647 = vmatpush.msra.mxu0 %v1618_v10 }
 0xb46   : > { %1648 = vmatpush.msra.mxu0 %v1617_v12 }
 0xbaf   : > { %v1580_v9 = vpop.xlane.xlu0 %1579 }
 0xbb0   : > { %v1582_v11 = vmul.f32 %v1580_v9, %v2130_v45 }
 0xbb2   : > { %v1584_v13 = vadd.f32 1e-05, %v1582_v11 }
 0xbb4   : > { %1915 = vrsqrt.f32 %v1584_v13  ;;  %vm1601_vm0 = vweird.f32 %v1584_v13 }
 0xbb7   : > { %v1576_v14 = vpop.xlane.xlu0 %1575 }
 0xbb8   : > { %v1581_v15 = vmul.f32 %v1576_v14, %v2130_v45 }
 0xbba   : > { %v1916_v16 = vpop.eup %1915  ;;  %v1583_v27 = vadd.f32 1e-05, %v1581_v15 }
 0xbbb   : > { %v1596_v17 = vmul.f32 %v1916_v16, %v1584_v13  ;;  %vm1602_vm15 = vweird.f32 %v1916_v16 }
 0xbbc   : > { %1917 = vrsqrt.f32 %v1583_v27  ;;  %vm1603_vm1 = vmor %vm1601_vm0, %vm1602_vm15  ;;  %vm1591_vm3 = vweird.f32 %v1583_v27 }
 0xbbd   : > { %v1597_v18 = vmul.f32 %v1916_v16, %v1596_v17 }
 0xbbf   : > { %v1598_v19 = vmul.f32 0.5, %v1597_v18 }
 0xbc1   : > { %v1599_v20 = vsub.f32 1.5, %v1598_v19 }
 0xbc2   : > { %v1918_v21 = vpop.eup %1917 }
 0xbc3   : > { %v1600_v8 = vmul.f32 %v1916_v16, %v1599_v20  ;;  %v1586_v22 = vmul.f32 %v1918_v21, %v1583_v27  ;;  %vm1592_vm2 = vweird.f32 %v1918_v21 }
 0xbc4   : > { %vm1593_vm4 = vmor %vm1591_vm3, %vm1592_vm2 }
 0xbc5   : > { %v1587_v23 = vmul.f32 %v1918_v21, %v1586_v22  ;;  %v1604_v24 = vsel %vm1603_vm1, %v1916_v16, %v1600_v8 }
 0xbc6   : > { %v1607_v41 = vrot.slane %v1604_v24, 1 }
 0xbc7   : > { %v1588_v25 = vmul.f32 0.5, %v1587_v23 }
 0xbc8   : > { %v1611_v45 = vmul.f32 %v1607_v41, %v1558_v63 }
 0xbc9   : > { %v1589_v26 = vsub.f32 1.5, %v1588_v25 }
 0xbca   : > { %v1616_v33 = vmul.f32 %v1914_v29, %v1611_v45 }
 0xbcb   : > { %v1590_v30 = vmul.f32 %v1918_v21, %v1589_v26 }
 0xbcc   : > { %v1628_v36 = vrot.slane %v1616_v33, 6 }
 0xbcd   : > { %v1594_v31 = vsel %vm1593_vm4, %v1918_v21, %v1590_v30 }
 0xbce   : > { %v1610_v32 = vmul.f32 %v1594_v31, %v2383_v55 }
 0xbd0   : > { %v1615_v34 = vmul.f32 %v1914_v29, %v1610_v32 }
 0xbd2   : > { %v1627_v35 = vrot.slane %v1615_v34, 7 }
 0xbd4   : > { %v1630_v37 = vsel %vm1629_vm5, %v1628_v36, %v1627_v35 }
 0xbd5   : > { %1809 = vmatmul.msk.f32.vlgmr.msra.gmra.mxu0 %vm598_vm9, %v1630_v37 }
 0xc52   : > { %v1650_v38 = vpop.f32.mrf.mxu0 }
 0xc53   : > { %1654 = vst.msk [vmem:[#allocation3] sm:$0x3] %vm1653_vm6, %v1650_v38 }
 0xc54 PF: > { %p1829_p6 = scmp.eq.s32.totalorder %s2048_s26, 1  ;;  %s1971_s23 = smov [#allocation3]  }
 0xc55   : > { %s1661_s15 = sshll.u32 %s1971_s23, 4  ;;  %s2450_s29 = sld [smem:[#allocation7_spill]]  ;;  %s1662_s15 = int_to_ptr.vmem [resolvable:$true] %s1661_s15 }
 0xc5b   : > { %s1663_s14 = sshll.u32 %s2450_s29, 4  ;;  %s1664_s14 = int_to_ptr.hbm [resolvable:$true] %s1663_s14 }
 0xc5c   : > { %1826 = dma.vmem_to_hbm [thread:$0]  (%p1829_p6), %s1662_s15, 32, %s1664_s14, [#allocation4]  }
 0xc5d   : > { %1952 = dma.done.wait (%p1829_p6), [#allocation4], 32  }
 0xc5e   : > { %1954 = vsyncadd (%p1829_p6), [#allocation4], 4294967264 }
 0xc5f PF: > { %s2451_s16 = sld [smem:[#allocation6_spill]] }
 0xc65   : > { %s24_s25 = sadd.s32 1, %s2451_s16  }
 0xc66   : > { %p21_p7 = scmp.ge.s32.totalorder %s24_s25, 4  }
 0xc68   :  { %23 = sbr.rel (!%p21_p7) target bundleno = 3 (0x3), region = 122 }
 0xc6d   :  { %1677 = vsyncpa [#allocation4], 1 }
 0xc6e   :  { %1679 = vsyncpa [#allocation4 + $0x1], 1 }

</bundles_post_ra>
